<compile_context>
chip_gen: v7x
topology: tpu7x:2x2x1
jax: 0.10.0
libtpu: 0.0.40
codegen_flags: <defaults>
</compile_context>

<pallas_src>
import math
import functools

import jax
import jax.numpy as jnp
from jax.experimental import pallas as pl
from jax.experimental.pallas import tpu as pltpu

BLOCK_EPS = 1e-6   # torchvision ViT encoder-block LayerNorm eps
FINAL_EPS = 1e-5   # nn.LayerNorm default eps (final self.ln)

PARAM_ORDER = ["ln1_g", "ln1_b", "wqkv", "bqkv", "wo", "bo",
               "ln2_g", "ln2_b", "w1", "b1", "w2", "b2"]


# ---------------------------------------------------------------- helpers ----
def _layernorm(x, gamma, beta, eps):
    mu = jnp.mean(x, axis=-1, keepdims=True)
    var = jnp.mean(jnp.square(x - mu), axis=-1, keepdims=True)
    return (x - mu) * jax.lax.rsqrt(var + eps) * gamma + beta


def _erf(x, approx_recip=False):
    # Abramowitz & Stegun 7.1.26 polynomial approximation, |error| < 1.5e-7.
    a1, a2, a3, a4, a5 = 0.254829592, -0.284496736, 1.421413741, -1.453152027, 1.061405429
    p = 0.3275911
    ax = jnp.abs(x)
    z = 1.0 + p * ax
    t = pl.reciprocal(z, approx=True) if approx_recip else 1.0 / z
    poly = ((((a5 * t + a4) * t + a3) * t + a2) * t + a1) * t
    y = 1.0 - poly * jnp.exp(-ax * ax)
    return jnp.where(x >= 0, y, -y)


def _gelu_exact(x, approx_recip=False):
    return 0.5 * x * (1.0 + _erf(x * (1.0 / math.sqrt(2.0)), approx_recip))


def _default_vmem_limit():
    """Generation-aware VMEM limit: capacity minus headroom for Mosaic scratch."""
    cap = None
    try:
        cap = getattr(pltpu.get_tpu_info(), "vmem_capacity_bytes", None)
    except Exception:
        cap = None
    if cap is None:
        cap = 64 * 1024 * 1024          # conservative: v7x physical VMEM per TC
    return int(min(max(cap - 16 * 1024 * 1024, 32 * 1024 * 1024), 112 * 1024 * 1024))


def _pick_block_batch(B, S, D, H, M, weight_itemsize, vmem_limit, max_bb=8):
    """Largest divisor of B (<= max_bb) whose f32 intermediates + double-buffered
    per-layer weight window fit comfortably in the VMEM budget."""
    per_layer_params = (D * 3 * D + 3 * D + D * D + D + D * M + M + M * D + D + 4 * D)
    fixed = 2 * per_layer_params * weight_itemsize          # double-buffered weights
    best = 1
    for bb in range(1, min(B, max_bb) + 1):
        if B % bb:
            continue
        # activation scratch + ctx scratch + x/out blocks (2x buffered) + qkv
        # + scores (s, p) + MLP intermediate, all f32 (conservative).
        inter = 4 * bb * (11 * S * D + 2 * H * S * S + 2 * S * M)
        if fixed + inter <= 0.6 * vmem_limit:
            best = bb
    return best


def fold_qk_scale(params, num_heads):
    """Fold the 1/sqrt(dh) attention scale into the Q columns of wqkv/bqkv.
    Call ONCE offline (not per forward call - wrapper-side per-call scaling is an
    anti-pattern); pass qk_scale_folded=True to vit_decoder afterwards."""
    D = params["wqkv"].shape[1]
    scale = 1.0 / math.sqrt(D // num_heads)
    new = dict(params)
    new["wqkv"] = params["wqkv"].at[:, :, :D].multiply(
        jnp.asarray(scale, params["wqkv"].dtype))
    new["bqkv"] = params["bqkv"].at[:, :, :D].multiply(
        jnp.asarray(scale, params["bqkv"].dtype))
    return new


# ----------------------------------------------------------------- kernel ----
def vit_decoder_kernel(x_ref,
                       ln1_g_ref, ln1_b_ref, wqkv_ref, bqkv_ref, wo_ref, bo_ref,
                       ln2_g_ref, ln2_b_ref, w1_ref, b1_ref, w2_ref, b2_ref,
                       lnf_g_ref, lnf_b_ref,
                       o_ref,
                       act_ref, ctx_ref,
                       *, num_heads, qk_scale):
    """Grid = (batch_group, layer).  Weights streamed over the layer axis; the
    running activation for the current batch group lives in act_ref (VMEM, f32)."""
    layer = pl.program_id(1)
    n_layers = pl.num_programs(1)

    Bb, S, D = x_ref.shape
    H = num_heads
    dh = D // H
    cdt = wqkv_ref.dtype                    # matmul-input ("streaming") dtype
    approx = cdt != jnp.float32             # cheap EUP approx only in bf16 mode

    @pl.when(layer == 0)
    def _():
        # self.dropout: identity at inference time.
        act_ref[...] = x_ref[...].reshape(Bb * S, D).astype(jnp.float32)

    x = act_ref[...]                        # (Bb*S, D) f32 carried activation

    # ----------------- attention branch (pre-LN) -----------------
    xn = _layernorm(x, ln1_g_ref[0], ln1_b_ref[0], BLOCK_EPS)
    qkv = jnp.dot(xn.astype(cdt), wqkv_ref[0],
                  preferred_element_type=jnp.float32)
    qkv = qkv + bqkv_ref[0].astype(jnp.float32)                 # (Bb*S, 3D) f32

    # Per-batch-element multi-head attention (static unrolled loop over Bb).
    for b in range(Bb):
        qkv_b = qkv[b * S:(b + 1) * S, :]                       # (S, 3D)
        q = qkv_b[:, 0 * D:1 * D].reshape(S, H, dh).transpose(1, 0, 2)   # (H,S,dh)
        k = qkv_b[:, 1 * D:2 * D].reshape(S, H, dh).transpose(1, 0, 2)
        v = qkv_b[:, 2 * D:3 * D].reshape(S, H, dh).transpose(1, 0, 2)
        if qk_scale != 1.0:                 # only when scale was NOT folded offline
            q = q * qk_scale

        s = jnp.einsum("hqd,hkd->hqk", q.astype(cdt), k.astype(cdt),
                       preferred_element_type=jnp.float32)      # (H, S, S)
        s = s - jnp.max(s, axis=-1, keepdims=True)
        p = jnp.exp(s)
        denom = jnp.sum(p, axis=-1, keepdims=True)
        if approx:
            p = p * pl.reciprocal(denom, approx=True)
        else:
            p = p / denom
        # attention_dropout: identity at inference time.
        ctx_b = jnp.einsum("hqk,hkd->hqd", p.astype(cdt), v.astype(cdt),
                           preferred_element_type=jnp.float32)  # (H, S, dh)
        ctx_ref[b * S:(b + 1) * S, :] = ctx_b.transpose(1, 0, 2).reshape(S, D)

    ctx = ctx_ref[...]                                          # (Bb*S, D)
    attn = jnp.dot(ctx.astype(cdt), wo_ref[0],
                   preferred_element_type=jnp.float32) + bo_ref[0].astype(jnp.float32)
    y = x + attn

    # ----------------- MLP branch (pre-LN) -----------------
    yn = _layernorm(y, ln2_g_ref[0], ln2_b_ref[0], BLOCK_EPS)
    h1 = jnp.dot(yn.astype(cdt), w1_ref[0],
                 preferred_element_type=jnp.float32) + b1_ref[0].astype(jnp.float32)
    h1 = _gelu_exact(h1, approx_recip=approx)        # exact-erf GELU in f32
    h2 = jnp.dot(h1.astype(cdt), w2_ref[0],
                 preferred_element_type=jnp.float32) + b2_ref[0].astype(jnp.float32)
    out = y + h2

    act_ref[...] = out                               # carry to next layer

    @pl.when(layer == n_layers - 1)
    def _():
        # Fused final nn.LayerNorm epilogue.
        o_ref[...] = _layernorm(out, lnf_g_ref[...], lnf_b_ref[...],
                                FINAL_EPS).astype(o_ref.dtype).reshape(Bb, S, D)


# ---------------------------------------------------------------- wrapper ----
def vit_decoder(x, params, final_ln, num_heads, *, block_batch=None,
                qk_scale_folded=False, vmem_limit_bytes=None):
    """x: (B, S, D) f32.  params: dict of per-layer-stacked weights (leading L axis).
    final_ln: (gamma, beta), each (1, D) f32.
    block_batch: batch elements per grid step (auto-budgeted against VMEM if None).
    qk_scale_folded: set True iff params went through fold_qk_scale()."""
    B, S, D = x.shape
    assert D % num_heads == 0, "hidden_dim must be divisible by num_heads"
    L = params["wqkv"].shape[0]
    M = params["w1"].shape[-1]
    lnf_g, lnf_b = final_ln

    if vmem_limit_bytes is None:
        vmem_limit_bytes = _default_vmem_limit()
    if block_batch is None:
        block_batch = _pick_block_batch(B, S, D, num_heads, M,
                                        params["wqkv"].dtype.itemsize,
                                        vmem_limit_bytes)
    Bb = block_batch
    assert B % Bb == 0, "block_batch must divide batch"

    x_spec = pl.BlockSpec((Bb, S, D), lambda g, l: (g, 0, 0))
    layer_specs = [pl.BlockSpec((1,) + tuple(params[k].shape[1:]),
                                lambda g, l: (l, 0, 0))
                   for k in PARAM_ORDER]
    lnf_spec = pl.BlockSpec((1, D), lambda g, l: (0, 0))

    qk_scale = 1.0 if qk_scale_folded else 1.0 / math.sqrt(D // num_heads)

    # Advisory cost estimate for the XLA scheduler.  Weight bytes are now
    # amortized over Bb batch elements per stream.
    matmul_flops = 2 * S * (3 * D * D) + 4 * S * S * D + 2 * S * D * D + 4 * S * D * M
    flops = B * L * matmul_flops
    transcendentals = B * L * (num_heads * S * S + S * M)
    param_bytes = sum(int(params[k].size) * params[k].dtype.itemsize for k in PARAM_ORDER)
    bytes_accessed = (B // Bb) * param_bytes + 2 * B * S * D * x.dtype.itemsize

    return pl.pallas_call(
        functools.partial(vit_decoder_kernel, num_heads=num_heads, qk_scale=qk_scale),
        out_shape=jax.ShapeDtypeStruct((B, S, D), x.dtype),
        grid=(B // Bb, L),
        in_specs=[x_spec] + layer_specs + [lnf_spec, lnf_spec],
        out_specs=pl.BlockSpec((Bb, S, D), lambda g, l: (g, 0, 0)),
        scratch_shapes=[pltpu.VMEM((Bb * S, D), jnp.float32),   # carried activation
                        pltpu.VMEM((Bb * S, D), jnp.float32)],  # merged-head context
        compiler_params=pltpu.CompilerParams(
            # layer axis carries the activation -> "arbitrary"; batch groups parallel.
            dimension_semantics=("parallel", "arbitrary"),
            vmem_limit_bytes=int(vmem_limit_bytes)),
        cost_estimate=pl.CostEstimate(flops=int(flops),
                                      transcendentals=int(transcendentals),
                                      bytes_accessed=int(bytes_accessed)),
    )(x, *[params[k] for k in PARAM_ORDER], lnf_g, lnf_b)


# ------------------------------------------------------ deterministic init ---
def init_params(key, num_layers, D, M, weight_dtype=jnp.float32):
    layers = []
    for i in range(num_layers):
        keys = jax.random.split(jax.random.fold_in(key, i), 6)
        layers.append(dict(
            ln1_g=jnp.ones((1, D), jnp.float32),
            ln1_b=jnp.zeros((1, D), jnp.float32),
            wqkv=(jax.random.normal(keys[0], (D, 3 * D), jnp.float32) / math.sqrt(D)).astype(weight_dtype),
            bqkv=(0.02 * jax.random.normal(keys[1], (1, 3 * D), jnp.float32)).astype(weight_dtype),
            wo=(jax.random.normal(keys[2], (D, D), jnp.float32) / math.sqrt(D)).astype(weight_dtype),
            bo=(0.02 * jax.random.normal(keys[3], (1, D), jnp.float32)).astype(weight_dtype),
            ln2_g=jnp.ones((1, D), jnp.float32),
            ln2_b=jnp.zeros((1, D), jnp.float32),
            w1=(jax.random.normal(keys[4], (D, M), jnp.float32) / math.sqrt(D)).astype(weight_dtype),
            b1=jnp.zeros((1, M), weight_dtype),
            w2=(jax.random.normal(keys[5], (M, D), jnp.float32) / math.sqrt(M)).astype(weight_dtype),
            b2=jnp.zeros((1, D), weight_dtype),
        ))
    stacked = {k: jnp.stack([lp[k] for lp in layers], axis=0) for k in PARAM_ORDER}
    final_ln = (jnp.ones((1, D), jnp.float32), jnp.zeros((1, D), jnp.float32))
    return stacked, final_ln


# ------------------------------------------------------ pure-JAX reference ---
def reference(x, params, final_ln, num_heads):
    """PyTorch-semantics forward pass (un-folded params, scores / sqrt(dh)),
    with the kernel's cast policy (matmul inputs in the weight dtype, f32 accum,
    f32 stats/softmax/GELU)."""
    B, S, D = x.shape
    H = num_heads
    dh = D // H
    L = params["wqkv"].shape[0]
    cdt = params["wqkv"].dtype
    x = x.astype(jnp.float32)
    for i in range(L):
        p = {k: params[k][i] for k in PARAM_ORDER}
        xn = _layernorm(x, p["ln1_g"], p["ln1_b"], BLOCK_EPS)
        qkv = jnp.dot(xn.astype(cdt), p["wqkv"],
                      preferred_element_type=jnp.float32) + p["bqkv"].astype(jnp.float32)
        q, k, v = jnp.split(qkv, 3, axis=-1)
        q = q.reshape(B, S, H, dh).transpose(0, 2, 1, 3)
        k = k.reshape(B, S, H, dh).transpose(0, 2, 1, 3)
        v = v.reshape(B, S, H, dh).transpose(0, 2, 1, 3)
        s = jnp.einsum("bhqd,bhkd->bhqk", q.astype(cdt), k.astype(cdt),
                       preferred_element_type=jnp.float32) / math.sqrt(dh)
        a = jax.nn.softmax(s, axis=-1)
        o = jnp.einsum("bhqk,bhkd->bhqd", a.astype(cdt), v.astype(cdt),
                       preferred_element_type=jnp.float32)
        o = o.transpose(0, 2, 1, 3).reshape(B, S, D)
        y = x + (jnp.dot(o.astype(cdt), p["wo"],
                         preferred_element_type=jnp.float32) + p["bo"].astype(jnp.float32))
        yn = _layernorm(y, p["ln2_g"], p["ln2_b"], BLOCK_EPS)
        h = jax.nn.gelu(jnp.dot(yn.astype(cdt), p["w1"],
                                preferred_element_type=jnp.float32)
                        + p["b1"].astype(jnp.float32), approximate=False)
        x = y + (jnp.dot(h.astype(cdt), p["w2"],
                         preferred_element_type=jnp.float32) + p["b2"].astype(jnp.float32))
    g, b = final_ln
    return _layernorm(x, g, b, FINAL_EPS)


# ------------------------------------------------------------------- main ----
if __name__ == "__main__":
    # ViTDecoder(seq_length=8, num_layers=2, num_heads=4, hidden_dim=32,
    #            mlp_dim=64, dropout=0.0, attention_dropout=0.0)
    # NOTE: toy shapes (D=32 < 128 lanes) underutilize the MXU/vregs; the fused
    # structure pays off at real ViT sizes (D>=768, S padded to a multiple of 8).
    B, S, D, H, M, L = 2, 8, 32, 4, 64, 2

    key = jax.random.PRNGKey(0)
    x = jax.random.normal(jax.random.fold_in(key, 999), (B, S, D), jnp.float32)

    # ---- float32 path: check against PyTorch-semantics reference ----
    params32, final_ln = init_params(key, L, D, M, weight_dtype=jnp.float32)
    folded32 = fold_qk_scale(params32, H)          # one-time offline fold
    out32 = jax.block_until_ready(
        vit_decoder(x, folded32, final_ln, H, qk_scale_folded=True))
    ref32 = reference(x, params32, final_ln, H)
    assert out32.shape == (B, S, D)
    err32 = float(jnp.max(jnp.abs(out32 - ref32)))
    assert jnp.allclose(out32, ref32, atol=1e-3, rtol=1e-3), f"f32 max_err={err32}"

    # ---- bf16 weight-streaming path (HBM-bandwidth optimization) ----
    # Looser tolerance: bf16 weight quantization + folded scale + EUP approx
    # reciprocal; this is a streaming-precision sanity check, not bit parity.
    params16, final_ln16 = init_params(key, L, D, M, weight_dtype=jnp.bfloat16)
    folded16 = fold_qk_scale(params16, H)
    out16 = jax.block_until_ready(
        vit_decoder(x, folded16, final_ln16, H, qk_scale_folded=True))
    ref16 = reference(x, params16, final_ln16, H)
    err16 = float(jnp.max(jnp.abs(out16 - ref16)))
    assert jnp.allclose(out16, ref16, atol=5e-2, rtol=5e-2), f"bf16 max_err={err16}"

    print("KERNEL_OK")
</pallas_src>

<mosaic_0001>
module attributes {stable_mosaic.version = 11 : i64} {
  func.func @vit_decoder_kernel(%arg0: i32, %arg1: i32, %arg2: memref<2x8x32xf32, #tpu.memory_space<vmem>>, %arg3: memref<1x1x32xf32, #tpu.memory_space<vmem>>, %arg4: memref<1x1x32xf32, #tpu.memory_space<vmem>>, %arg5: memref<1x32x96xf32, #tpu.memory_space<vmem>>, %arg6: memref<1x1x96xf32, #tpu.memory_space<vmem>>, %arg7: memref<1x32x32xf32, #tpu.memory_space<vmem>>, %arg8: memref<1x1x32xf32, #tpu.memory_space<vmem>>, %arg9: memref<1x1x32xf32, #tpu.memory_space<vmem>>, %arg10: memref<1x1x32xf32, #tpu.memory_space<vmem>>, %arg11: memref<1x32x64xf32, #tpu.memory_space<vmem>>, %arg12: memref<1x1x64xf32, #tpu.memory_space<vmem>>, %arg13: memref<1x64x32xf32, #tpu.memory_space<vmem>>, %arg14: memref<1x1x32xf32, #tpu.memory_space<vmem>>, %arg15: memref<1x32xf32, #tpu.memory_space<vmem>>, %arg16: memref<1x32xf32, #tpu.memory_space<vmem>>, %arg17: memref<2x8x32xf32, #tpu.memory_space<vmem>>, %arg18: memref<16x32xf32, #tpu.memory_space<vmem>>, %arg19: memref<16x32xf32, #tpu.memory_space<vmem>>) attributes {dimension_semantics = [#tpu.dimension_semantics<parallel>, #tpu.dimension_semantics<arbitrary>], iteration_bounds = array<i64: 1, 2>, scalar_prefetch = 0 : i64, scratch_operands = 2 : i64, tpu.core_type = #tpu.core_type<tc>, window_params = [{transform_indices = @transform_0, window_bounds = array<i64: 2, 8, 32>}, {transform_indices = @transform_1, window_bounds = array<i64: 1, 1, 32>}, {transform_indices = @transform_2, window_bounds = array<i64: 1, 1, 32>}, {transform_indices = @transform_3, window_bounds = array<i64: 1, 32, 96>}, {transform_indices = @transform_4, window_bounds = array<i64: 1, 1, 96>}, {transform_indices = @transform_5, window_bounds = array<i64: 1, 32, 32>}, {transform_indices = @transform_6, window_bounds = array<i64: 1, 1, 32>}, {transform_indices = @transform_7, window_bounds = array<i64: 1, 1, 32>}, {transform_indices = @transform_8, window_bounds = array<i64: 1, 1, 32>}, {transform_indices = @transform_9, window_bounds = array<i64: 1, 32, 64>}, {transform_indices = @transform_10, window_bounds = array<i64: 1, 1, 64>}, {transform_indices = @transform_11, window_bounds = array<i64: 1, 64, 32>}, {transform_indices = @transform_12, window_bounds = array<i64: 1, 1, 32>}, {pipeline_mode = #tpu.pipeline_mode<synchronous>, transform_indices = @transform_13, window_bounds = array<i64: 1, 32>}, {pipeline_mode = #tpu.pipeline_mode<synchronous>, transform_indices = @transform_14, window_bounds = array<i64: 1, 32>}, {transform_indices = @transform_15, window_bounds = array<i64: 2, 8, 32>}]} {
    %c0_i32 = arith.constant 0 : i32
    %0 = arith.cmpi eq, %arg1, %c0_i32 : i32
    %1 = arith.extui %0 : i1 to i32
    %c0_i32_0 = arith.constant 0 : i32
    %2 = arith.cmpi ne, %1, %c0_i32_0 : i32
    scf.if %2 {
      %c0_82 = arith.constant 0 : index
      %c0_83 = arith.constant 0 : index
      %c0_84 = arith.constant 0 : index
      %179 = vector.load %arg2[%c0_82, %c0_83, %c0_84] : memref<2x8x32xf32, #tpu.memory_space<vmem>>, vector<2x8x32xf32>
      %180 = vector.shape_cast %179 : vector<2x8x32xf32> to vector<16x32xf32>
      %c0_85 = arith.constant 0 : index
      %c0_86 = arith.constant 0 : index
      %181 = vector.load %arg18[%c0_85, %c0_86] : memref<16x32xf32, #tpu.memory_space<vmem>>, vector<16x32xf32>
      tpu.vector_store %arg18[%c0_85, %c0_86], %180 {strides = array<i32>} : memref<16x32xf32, #tpu.memory_space<vmem>>, vector<16x32xf32>,
    } else {
    }
    %c0 = arith.constant 0 : index
    %c0_1 = arith.constant 0 : index
    %3 = vector.load %arg18[%c0, %c0_1] : memref<16x32xf32, #tpu.memory_space<vmem>>, vector<16x32xf32>
    %c0_2 = arith.constant 0 : index
    %c0_3 = arith.constant 0 : index
    %c0_4 = arith.constant 0 : index
    %4 = vector.load %arg3[%c0_2, %c0_3, %c0_4] : memref<1x1x32xf32, #tpu.memory_space<vmem>>, vector<1x1x32xf32>
    %5 = vector.shape_cast %4 : vector<1x1x32xf32> to vector<1x32xf32>
    %c0_5 = arith.constant 0 : index
    %c0_6 = arith.constant 0 : index
    %c0_7 = arith.constant 0 : index
    %6 = vector.load %arg4[%c0_5, %c0_6, %c0_7] : memref<1x1x32xf32, #tpu.memory_space<vmem>>, vector<1x1x32xf32>
    %7 = vector.shape_cast %6 : vector<1x1x32xf32> to vector<1x32xf32>
    %cst = arith.constant dense<0.000000e+00> : vector<16xf32>
    %8 = vector.multi_reduction <add>, %3, %cst [1] : vector<16x32xf32> to vector<16xf32>
    %9 = vector.shape_cast %8 : vector<16xf32> to vector<16x1xf32>
    %cst_8 = arith.constant 3.200000e+01 : f32
    %10 = vector.broadcast %cst_8 : f32 to vector<16x1xf32>
    %11 = arith.divf %9, %10 : vector<16x1xf32>
    %12 = vector.broadcast %11 : vector<16x1xf32> to vector<16x32xf32>
    %13 = arith.subf %3, %12 : vector<16x32xf32>
    %14 = arith.mulf %13, %13 : vector<16x32xf32>
    %cst_9 = arith.constant dense<0.000000e+00> : vector<16xf32>
    %15 = vector.multi_reduction <add>, %14, %cst_9 [1] : vector<16x32xf32> to vector<16xf32>
    %16 = vector.shape_cast %15 : vector<16xf32> to vector<16x1xf32>
    %cst_10 = arith.constant 3.200000e+01 : f32
    %17 = vector.broadcast %cst_10 : f32 to vector<16x1xf32>
    %18 = arith.divf %16, %17 : vector<16x1xf32>
    %19 = vector.broadcast %11 : vector<16x1xf32> to vector<16x32xf32>
    %20 = arith.subf %3, %19 : vector<16x32xf32>
    %cst_11 = arith.constant 9.99999997E-7 : f32
    %21 = vector.broadcast %cst_11 : f32 to vector<16x1xf32>
    %22 = arith.addf %18, %21 : vector<16x1xf32>
    %23 = math.rsqrt %22 : vector<16x1xf32>
    %24 = vector.broadcast %23 : vector<16x1xf32> to vector<16x32xf32>
    %25 = arith.mulf %20, %24 : vector<16x32xf32>
    %26 = vector.broadcast %5 : vector<1x32xf32> to vector<16x32xf32>
    %27 = arith.mulf %25, %26 : vector<16x32xf32>
    %28 = vector.broadcast %7 : vector<1x32xf32> to vector<16x32xf32>
    %29 = arith.addf %27, %28 : vector<16x32xf32>
    %c0_12 = arith.constant 0 : index
    %c0_13 = arith.constant 0 : index
    %c0_14 = arith.constant 0 : index
    %30 = vector.load %arg5[%c0_12, %c0_13, %c0_14] : memref<1x32x96xf32, #tpu.memory_space<vmem>>, vector<1x32x96xf32>
    %31 = vector.shape_cast %30 : vector<1x32x96xf32> to vector<32x96xf32>
    %cst_15 = arith.constant dense<0.000000e+00> : vector<16x96xf32>
    %32 = tpu.matmul %29, %31, %cst_15 {dimension_numbers = #tpu.dot_dimension_numbers<[1], [0], [0], [1], [0, 0, 1, 1], [], []>} : vector<16x32xf32>, vector<32x96xf32>, vector<16x96xf32> -> vector<16x96xf32>
    %c0_16 = arith.constant 0 : index
    %c0_17 = arith.constant 0 : index
    %c0_18 = arith.constant 0 : index
    %33 = vector.load %arg6[%c0_16, %c0_17, %c0_18] : memref<1x1x96xf32, #tpu.memory_space<vmem>>, vector<1x1x96xf32>
    %34 = vector.shape_cast %33 : vector<1x1x96xf32> to vector<1x96xf32>
    %35 = vector.broadcast %34 : vector<1x96xf32> to vector<16x96xf32>
    %36 = arith.addf %32, %35 : vector<16x96xf32>
    %37 = vector.extract_strided_slice %36 {offsets = [0, 0], sizes = [8, 96], strides = [1, 1]} : vector<16x96xf32> to vector<8x96xf32>
    %38 = vector.extract_strided_slice %37 {offsets = [0, 0], sizes = [8, 32], strides = [1, 1]} : vector<8x96xf32> to vector<8x32xf32>
    %39 = vector.shape_cast %38 : vector<8x32xf32> to vector<8x4x8xf32>
    %40 = tpu.transpose %39, [1, 0, 2] : vector<8x4x8xf32> -> vector<4x8x8xf32>
    %41 = vector.extract_strided_slice %37 {offsets = [0, 32], sizes = [8, 32], strides = [1, 1]} : vector<8x96xf32> to vector<8x32xf32>
    %42 = vector.shape_cast %41 : vector<8x32xf32> to vector<8x4x8xf32>
    %43 = tpu.transpose %42, [1, 0, 2] : vector<8x4x8xf32> -> vector<4x8x8xf32>
    %44 = vector.extract_strided_slice %37 {offsets = [0, 64], sizes = [8, 32], strides = [1, 1]} : vector<8x96xf32> to vector<8x32xf32>
    %45 = vector.shape_cast %44 : vector<8x32xf32> to vector<8x4x8xf32>
    %46 = tpu.transpose %45, [1, 0, 2] : vector<8x4x8xf32> -> vector<4x8x8xf32>
    "tpu.trace_start"() <{level = 10 : i32, message = "hqd,hkd->hqk"}> : () -> ()
    %cst_19 = arith.constant dense<0.000000e+00> : vector<4x8x8xf32>
    %47 = tpu.matmul %40, %43, %cst_19 {dimension_numbers = #tpu.dot_dimension_numbers<[2], [2], [1], [1], [0, 0, 0, 1, 1, 1], [0], [0]>} : vector<4x8x8xf32>, vector<4x8x8xf32>, vector<4x8x8xf32> -> vector<4x8x8xf32>
    "tpu.trace_stop"() : () -> ()
    %cst_20 = arith.constant dense<0xFF800000> : vector<4x8xf32>
    %48 = vector.multi_reduction <maximumf>, %47, %cst_20 [2] : vector<4x8x8xf32> to vector<4x8xf32>
    %49 = vector.shape_cast %48 : vector<4x8xf32> to vector<4x8x1xf32>
    %50 = vector.broadcast %49 : vector<4x8x1xf32> to vector<4x8x8xf32>
    %51 = arith.subf %47, %50 : vector<4x8x8xf32>
    %52 = math.exp %51 : vector<4x8x8xf32>
    %cst_21 = arith.constant dense<0.000000e+00> : vector<4x8xf32>
    %53 = vector.multi_reduction <add>, %52, %cst_21 [2] : vector<4x8x8xf32> to vector<4x8xf32>
    %54 = vector.shape_cast %53 : vector<4x8xf32> to vector<4x8x1xf32>
    %55 = vector.broadcast %54 : vector<4x8x1xf32> to vector<4x8x8xf32>
    %56 = arith.divf %52, %55 : vector<4x8x8xf32>
    "tpu.trace_start"() <{level = 10 : i32, message = "hqk,hkd->hqd"}> : () -> ()
    %cst_22 = arith.constant dense<0.000000e+00> : vector<4x8x8xf32>
    %57 = tpu.matmul %56, %46, %cst_22 {dimension_numbers = #tpu.dot_dimension_numbers<[2], [1], [1], [2], [0, 0, 0, 1, 1, 2], [0], [0]>} : vector<4x8x8xf32>, vector<4x8x8xf32>, vector<4x8x8xf32> -> vector<4x8x8xf32>
    "tpu.trace_stop"() : () -> ()
    %58 = tpu.transpose %57, [1, 0, 2] : vector<4x8x8xf32> -> vector<8x4x8xf32>
    %59 = vector.shape_cast %58 : vector<8x4x8xf32> to vector<8x32xf32>
    %c0_23 = arith.constant 0 : index
    %c0_24 = arith.constant 0 : index
    %60 = vector.load %arg19[%c0_23, %c0_24] : memref<16x32xf32, #tpu.memory_space<vmem>>, vector<8x32xf32>
    tpu.vector_store %arg19[%c0_23, %c0_24], %59 {strides = array<i32>} : memref<16x32xf32, #tpu.memory_space<vmem>>, vector<8x32xf32>,
    %61 = vector.extract_strided_slice %36 {offsets = [8, 0], sizes = [8, 96], strides = [1, 1]} : vector<16x96xf32> to vector<8x96xf32>
    %62 = vector.extract_strided_slice %61 {offsets = [0, 0], sizes = [8, 32], strides = [1, 1]} : vector<8x96xf32> to vector<8x32xf32>
    %63 = vector.shape_cast %62 : vector<8x32xf32> to vector<8x4x8xf32>
    %64 = tpu.transpose %63, [1, 0, 2] : vector<8x4x8xf32> -> vector<4x8x8xf32>
    %65 = vector.extract_strided_slice %61 {offsets = [0, 32], sizes = [8, 32], strides = [1, 1]} : vector<8x96xf32> to vector<8x32xf32>
    %66 = vector.shape_cast %65 : vector<8x32xf32> to vector<8x4x8xf32>
    %67 = tpu.transpose %66, [1, 0, 2] : vector<8x4x8xf32> -> vector<4x8x8xf32>
    %68 = vector.extract_strided_slice %61 {offsets = [0, 64], sizes = [8, 32], strides = [1, 1]} : vector<8x96xf32> to vector<8x32xf32>
    %69 = vector.shape_cast %68 : vector<8x32xf32> to vector<8x4x8xf32>
    %70 = tpu.transpose %69, [1, 0, 2] : vector<8x4x8xf32> -> vector<4x8x8xf32>
    "tpu.trace_start"() <{level = 10 : i32, message = "hqd,hkd->hqk"}> : () -> ()
    %cst_25 = arith.constant dense<0.000000e+00> : vector<4x8x8xf32>
    %71 = tpu.matmul %64, %67, %cst_25 {dimension_numbers = #tpu.dot_dimension_numbers<[2], [2], [1], [1], [0, 0, 0, 1, 1, 1], [0], [0]>} : vector<4x8x8xf32>, vector<4x8x8xf32>, vector<4x8x8xf32> -> vector<4x8x8xf32>
    "tpu.trace_stop"() : () -> ()
    %cst_26 = arith.constant dense<0xFF800000> : vector<4x8xf32>
    %72 = vector.multi_reduction <maximumf>, %71, %cst_26 [2] : vector<4x8x8xf32> to vector<4x8xf32>
    %73 = vector.shape_cast %72 : vector<4x8xf32> to vector<4x8x1xf32>
    %74 = vector.broadcast %73 : vector<4x8x1xf32> to vector<4x8x8xf32>
    %75 = arith.subf %71, %74 : vector<4x8x8xf32>
    %76 = math.exp %75 : vector<4x8x8xf32>
    %cst_27 = arith.constant dense<0.000000e+00> : vector<4x8xf32>
    %77 = vector.multi_reduction <add>, %76, %cst_27 [2] : vector<4x8x8xf32> to vector<4x8xf32>
    %78 = vector.shape_cast %77 : vector<4x8xf32> to vector<4x8x1xf32>
    %79 = vector.broadcast %78 : vector<4x8x1xf32> to vector<4x8x8xf32>
    %80 = arith.divf %76, %79 : vector<4x8x8xf32>
    "tpu.trace_start"() <{level = 10 : i32, message = "hqk,hkd->hqd"}> : () -> ()
    %cst_28 = arith.constant dense<0.000000e+00> : vector<4x8x8xf32>
    %81 = tpu.matmul %80, %70, %cst_28 {dimension_numbers = #tpu.dot_dimension_numbers<[2], [1], [1], [2], [0, 0, 0, 1, 1, 2], [0], [0]>} : vector<4x8x8xf32>, vector<4x8x8xf32>, vector<4x8x8xf32> -> vector<4x8x8xf32>
    "tpu.trace_stop"() : () -> ()
    %82 = tpu.transpose %81, [1, 0, 2] : vector<4x8x8xf32> -> vector<8x4x8xf32>
    %83 = vector.shape_cast %82 : vector<8x4x8xf32> to vector<8x32xf32>
    %c8 = arith.constant 8 : index
    %c0_29 = arith.constant 0 : index
    %84 = vector.load %arg19[%c8, %c0_29] : memref<16x32xf32, #tpu.memory_space<vmem>>, vector<8x32xf32>
    tpu.vector_store %arg19[%c8, %c0_29], %83 {strides = array<i32>} : memref<16x32xf32, #tpu.memory_space<vmem>>, vector<8x32xf32>,
    %c0_30 = arith.constant 0 : index
    %c0_31 = arith.constant 0 : index
    %85 = vector.load %arg19[%c0_30, %c0_31] : memref<16x32xf32, #tpu.memory_space<vmem>>, vector<16x32xf32>
    %c0_32 = arith.constant 0 : index
    %c0_33 = arith.constant 0 : index
    %c0_34 = arith.constant 0 : index
    %86 = vector.load %arg7[%c0_32, %c0_33, %c0_34] : memref<1x32x32xf32, #tpu.memory_space<vmem>>, vector<1x32x32xf32>
    %87 = vector.shape_cast %86 : vector<1x32x32xf32> to vector<32x32xf32>
    %cst_35 = arith.constant dense<0.000000e+00> : vector<16x32xf32>
    %88 = tpu.matmul %85, %87, %cst_35 {dimension_numbers = #tpu.dot_dimension_numbers<[1], [0], [0], [1], [0, 0, 1, 1], [], []>} : vector<16x32xf32>, vector<32x32xf32>, vector<16x32xf32> -> vector<16x32xf32>
    %c0_36 = arith.constant 0 : index
    %c0_37 = arith.constant 0 : index
    %c0_38 = arith.constant 0 : index
    %89 = vector.load %arg8[%c0_36, %c0_37, %c0_38] : memref<1x1x32xf32, #tpu.memory_space<vmem>>, vector<1x1x32xf32>
    %90 = vector.shape_cast %89 : vector<1x1x32xf32> to vector<1x32xf32>
    %91 = vector.broadcast %90 : vector<1x32xf32> to vector<16x32xf32>
    %92 = arith.addf %88, %91 : vector<16x32xf32>
    %93 = arith.addf %3, %92 : vector<16x32xf32>
    %c0_39 = arith.constant 0 : index
    %c0_40 = arith.constant 0 : index
    %c0_41 = arith.constant 0 : index
    %94 = vector.load %arg9[%c0_39, %c0_40, %c0_41] : memref<1x1x32xf32, #tpu.memory_space<vmem>>, vector<1x1x32xf32>
    %95 = vector.shape_cast %94 : vector<1x1x32xf32> to vector<1x32xf32>
    %c0_42 = arith.constant 0 : index
    %c0_43 = arith.constant 0 : index
    %c0_44 = arith.constant 0 : index
    %96 = vector.load %arg10[%c0_42, %c0_43, %c0_44] : memref<1x1x32xf32, #tpu.memory_space<vmem>>, vector<1x1x32xf32>
    %97 = vector.shape_cast %96 : vector<1x1x32xf32> to vector<1x32xf32>
    %cst_45 = arith.constant dense<0.000000e+00> : vector<16xf32>
    %98 = vector.multi_reduction <add>, %93, %cst_45 [1] : vector<16x32xf32> to vector<16xf32>
    %99 = vector.shape_cast %98 : vector<16xf32> to vector<16x1xf32>
    %cst_46 = arith.constant 3.200000e+01 : f32
    %100 = vector.broadcast %cst_46 : f32 to vector<16x1xf32>
    %101 = arith.divf %99, %100 : vector<16x1xf32>
    %102 = vector.broadcast %101 : vector<16x1xf32> to vector<16x32xf32>
    %103 = arith.subf %93, %102 : vector<16x32xf32>
    %104 = arith.mulf %103, %103 : vector<16x32xf32>
    %cst_47 = arith.constant dense<0.000000e+00> : vector<16xf32>
    %105 = vector.multi_reduction <add>, %104, %cst_47 [1] : vector<16x32xf32> to vector<16xf32>
    %106 = vector.shape_cast %105 : vector<16xf32> to vector<16x1xf32>
    %cst_48 = arith.constant 3.200000e+01 : f32
    %107 = vector.broadcast %cst_48 : f32 to vector<16x1xf32>
    %108 = arith.divf %106, %107 : vector<16x1xf32>
    %109 = vector.broadcast %101 : vector<16x1xf32> to vector<16x32xf32>
    %110 = arith.subf %93, %109 : vector<16x32xf32>
    %cst_49 = arith.constant 9.99999997E-7 : f32
    %111 = vector.broadcast %cst_49 : f32 to vector<16x1xf32>
    %112 = arith.addf %108, %111 : vector<16x1xf32>
    %113 = math.rsqrt %112 : vector<16x1xf32>
    %114 = vector.broadcast %113 : vector<16x1xf32> to vector<16x32xf32>
    %115 = arith.mulf %110, %114 : vector<16x32xf32>
    %116 = vector.broadcast %95 : vector<1x32xf32> to vector<16x32xf32>
    %117 = arith.mulf %115, %116 : vector<16x32xf32>
    %118 = vector.broadcast %97 : vector<1x32xf32> to vector<16x32xf32>
    %119 = arith.addf %117, %118 : vector<16x32xf32>
    %c0_50 = arith.constant 0 : index
    %c0_51 = arith.constant 0 : index
    %c0_52 = arith.constant 0 : index
    %120 = vector.load %arg11[%c0_50, %c0_51, %c0_52] : memref<1x32x64xf32, #tpu.memory_space<vmem>>, vector<1x32x64xf32>
    %121 = vector.shape_cast %120 : vector<1x32x64xf32> to vector<32x64xf32>
    %cst_53 = arith.constant dense<0.000000e+00> : vector<16x64xf32>
    %122 = tpu.matmul %119, %121, %cst_53 {dimension_numbers = #tpu.dot_dimension_numbers<[1], [0], [0], [1], [0, 0, 1, 1], [], []>} : vector<16x32xf32>, vector<32x64xf32>, vector<16x64xf32> -> vector<16x64xf32>
    %c0_54 = arith.constant 0 : index
    %c0_55 = arith.constant 0 : index
    %c0_56 = arith.constant 0 : index
    %123 = vector.load %arg12[%c0_54, %c0_55, %c0_56] : memref<1x1x64xf32, #tpu.memory_space<vmem>>, vector<1x1x64xf32>
    %124 = vector.shape_cast %123 : vector<1x1x64xf32> to vector<1x64xf32>
    %125 = vector.broadcast %124 : vector<1x64xf32> to vector<16x64xf32>
    %126 = arith.addf %122, %125 : vector<16x64xf32>
    %cst_57 = arith.constant 5.000000e-01 : f32
    %127 = vector.broadcast %cst_57 : f32 to vector<16x64xf32>
    %128 = arith.mulf %127, %126 : vector<16x64xf32>
    %cst_58 = arith.constant 0.707106769 : f32
    %129 = vector.broadcast %cst_58 : f32 to vector<16x64xf32>
    %130 = arith.mulf %126, %129 : vector<16x64xf32>
    %131 = math.absf %130 : vector<16x64xf32>
    %cst_59 = arith.constant 0.327591091 : f32
    %132 = vector.broadcast %cst_59 : f32 to vector<16x64xf32>
    %133 = arith.mulf %132, %131 : vector<16x64xf32>
    %cst_60 = arith.constant 1.000000e+00 : f32
    %134 = vector.broadcast %cst_60 : f32 to vector<16x64xf32>
    %135 = arith.addf %134, %133 : vector<16x64xf32>
    %cst_61 = arith.constant 1.000000e+00 : f32
    %136 = vector.broadcast %cst_61 : f32 to vector<16x64xf32>
    %137 = arith.divf %136, %135 : vector<16x64xf32>
    %cst_62 = arith.constant 1.06140542 : f32
    %138 = vector.broadcast %cst_62 : f32 to vector<16x64xf32>
    %139 = arith.mulf %138, %137 : vector<16x64xf32>
    %cst_63 = arith.constant -1.45315206 : f32
    %140 = vector.broadcast %cst_63 : f32 to vector<16x64xf32>
    %141 = arith.addf %139, %140 : vector<16x64xf32>
    %142 = arith.mulf %141, %137 : vector<16x64xf32>
    %cst_64 = arith.constant 1.42141378 : f32
    %143 = vector.broadcast %cst_64 : f32 to vector<16x64xf32>
    %144 = arith.addf %142, %143 : vector<16x64xf32>
    %145 = arith.mulf %144, %137 : vector<16x64xf32>
    %cst_65 = arith.constant -0.284496725 : f32
    %146 = vector.broadcast %cst_65 : f32 to vector<16x64xf32>
    %147 = arith.addf %145, %146 : vector<16x64xf32>
    %148 = arith.mulf %147, %137 : vector<16x64xf32>
    %cst_66 = arith.constant 0.254829586 : f32
    %149 = vector.broadcast %cst_66 : f32 to vector<16x64xf32>
    %150 = arith.addf %148, %149 : vector<16x64xf32>
    %151 = arith.mulf %150, %137 : vector<16x64xf32>
    %cst_67 = arith.constant 0.000000e+00 : f32
    %152 = vector.broadcast %cst_67 : f32 to vector<16x64xf32>
    %153 = arith.subf %152, %131 : vector<16x64xf32>
    %154 = arith.mulf %153, %131 : vector<16x64xf32>
    %155 = math.exp %154 : vector<16x64xf32>
    %156 = arith.mulf %151, %155 : vector<16x64xf32>
    %cst_68 = arith.constant 1.000000e+00 : f32
    %157 = vector.broadcast %cst_68 : f32 to vector<16x64xf32>
    %158 = arith.subf %157, %156 : vector<16x64xf32>
    %cst_69 = arith.constant 0.000000e+00 : f32
    %159 = vector.broadcast %cst_69 : f32 to vector<16x64xf32>
    %160 = arith.cmpf oge, %130, %159 : vector<16x64xf32>
    %cst_70 = arith.constant 0.000000e+00 : f32
    %161 = vector.broadcast %cst_70 : f32 to vector<16x64xf32>
    %162 = arith.subf %161, %158 : vector<16x64xf32>
    %163 = arith.select %160, %158, %162 : vector<16x64xi1>, vector<16x64xf32>
    %cst_71 = arith.constant 1.000000e+00 : f32
    %164 = vector.broadcast %cst_71 : f32 to vector<16x64xf32>
    %165 = arith.addf %164, %163 : vector<16x64xf32>
    %166 = arith.mulf %128, %165 : vector<16x64xf32>
    %c0_72 = arith.constant 0 : index
    %c0_73 = arith.constant 0 : index
    %c0_74 = arith.constant 0 : index
    %167 = vector.load %arg13[%c0_72, %c0_73, %c0_74] : memref<1x64x32xf32, #tpu.memory_space<vmem>>, vector<1x64x32xf32>
    %168 = vector.shape_cast %167 : vector<1x64x32xf32> to vector<64x32xf32>
    %cst_75 = arith.constant dense<0.000000e+00> : vector<16x32xf32>
    %169 = tpu.matmul %166, %168, %cst_75 {dimension_numbers = #tpu.dot_dimension_numbers<[1], [0], [0], [1], [0, 0, 1, 1], [], []>} : vector<16x64xf32>, vector<64x32xf32>, vector<16x32xf32> -> vector<16x32xf32>
    %c0_76 = arith.constant 0 : index
    %c0_77 = arith.constant 0 : index
    %c0_78 = arith.constant 0 : index
    %170 = vector.load %arg14[%c0_76, %c0_77, %c0_78] : memref<1x1x32xf32, #tpu.memory_space<vmem>>, vector<1x1x32xf32>
    %171 = vector.shape_cast %170 : vector<1x1x32xf32> to vector<1x32xf32>
    %172 = vector.broadcast %171 : vector<1x32xf32> to vector<16x32xf32>
    %173 = arith.addf %169, %172 : vector<16x32xf32>
    %174 = arith.addf %93, %173 : vector<16x32xf32>
    %c0_79 = arith.constant 0 : index
    %c0_80 = arith.constant 0 : index
    %175 = vector.load %arg18[%c0_79, %c0_80] : memref<16x32xf32, #tpu.memory_space<vmem>>, vector<16x32xf32>
    tpu.vector_store %arg18[%c0_79, %c0_80], %174 {strides = array<i32>} : memref<16x32xf32, #tpu.memory_space<vmem>>, vector<16x32xf32>,
    %c1_i32 = arith.constant 1 : i32
    %176 = arith.cmpi eq, %arg1, %c1_i32 : i32
    %177 = arith.extui %176 : i1 to i32
    %c0_i32_81 = arith.constant 0 : i32
    %178 = arith.cmpi ne, %177, %c0_i32_81 : i32
    scf.if %178 {
      %c0_82 = arith.constant 0 : index
      %c0_83 = arith.constant 0 : index
      %179 = vector.load %arg15[%c0_82, %c0_83] : memref<1x32xf32, #tpu.memory_space<vmem>>, vector<1x32xf32>
      %c0_84 = arith.constant 0 : index
      %c0_85 = arith.constant 0 : index
      %180 = vector.load %arg16[%c0_84, %c0_85] : memref<1x32xf32, #tpu.memory_space<vmem>>, vector<1x32xf32>
      %cst_86 = arith.constant dense<0.000000e+00> : vector<16xf32>
      %181 = vector.multi_reduction <add>, %174, %cst_86 [1] : vector<16x32xf32> to vector<16xf32>
      %182 = vector.shape_cast %181 : vector<16xf32> to vector<16x1xf32>
      %cst_87 = arith.constant 3.200000e+01 : f32
      %183 = vector.broadcast %cst_87 : f32 to vector<16x1xf32>
      %184 = arith.divf %182, %183 : vector<16x1xf32>
      %185 = vector.broadcast %184 : vector<16x1xf32> to vector<16x32xf32>
      %186 = arith.subf %174, %185 : vector<16x32xf32>
      %187 = arith.mulf %186, %186 : vector<16x32xf32>
      %cst_88 = arith.constant dense<0.000000e+00> : vector<16xf32>
      %188 = vector.multi_reduction <add>, %187, %cst_88 [1] : vector<16x32xf32> to vector<16xf32>
      %189 = vector.shape_cast %188 : vector<16xf32> to vector<16x1xf32>
      %cst_89 = arith.constant 3.200000e+01 : f32
      %190 = vector.broadcast %cst_89 : f32 to vector<16x1xf32>
      %191 = arith.divf %189, %190 : vector<16x1xf32>
      %192 = vector.broadcast %184 : vector<16x1xf32> to vector<16x32xf32>
      %193 = arith.subf %174, %192 : vector<16x32xf32>
      %cst_90 = arith.constant 9.99999974E-6 : f32
      %194 = vector.broadcast %cst_90 : f32 to vector<16x1xf32>
      %195 = arith.addf %191, %194 : vector<16x1xf32>
      %196 = math.rsqrt %195 : vector<16x1xf32>
      %197 = vector.broadcast %196 : vector<16x1xf32> to vector<16x32xf32>
      %198 = arith.mulf %193, %197 : vector<16x32xf32>
      %199 = vector.broadcast %179 : vector<1x32xf32> to vector<16x32xf32>
      %200 = arith.mulf %198, %199 : vector<16x32xf32>
      %201 = vector.broadcast %180 : vector<1x32xf32> to vector<16x32xf32>
      %202 = arith.addf %200, %201 : vector<16x32xf32>
      %203 = vector.shape_cast %202 : vector<16x32xf32> to vector<2x8x32xf32>
      %c0_91 = arith.constant 0 : index
      %c0_92 = arith.constant 0 : index
      %c0_93 = arith.constant 0 : index
      %204 = vector.load %arg17[%c0_91, %c0_92, %c0_93] : memref<2x8x32xf32, #tpu.memory_space<vmem>>, vector<2x8x32xf32>
      tpu.vector_store %arg17[%c0_91, %c0_92, %c0_93], %203 {strides = array<i32>} : memref<2x8x32xf32, #tpu.memory_space<vmem>>, vector<2x8x32xf32>,
    } else {
    }
    return
  }
  func.func @transform_0(%arg0: i32, %arg1: i32) -> (i32, i32, i32) {
    %c0_i32 = arith.constant 0 : i32
    %c0_i32_0 = arith.constant 0 : i32
    %c0_i32_1 = arith.constant 0 : i32
    return %arg0, %c0_i32, %c0_i32_0 : i32, i32, i32
  }
  func.func @transform_1(%arg0: i32, %arg1: i32) -> (i32, i32, i32) {
    %c0_i32 = arith.constant 0 : i32
    %c0_i32_0 = arith.constant 0 : i32
    %c0_i32_1 = arith.constant 0 : i32
    return %arg1, %c0_i32, %c0_i32_0 : i32, i32, i32
  }
  func.func @transform_2(%arg0: i32, %arg1: i32) -> (i32, i32, i32) {
    %c0_i32 = arith.constant 0 : i32
    %c0_i32_0 = arith.constant 0 : i32
    %c0_i32_1 = arith.constant 0 : i32
    return %arg1, %c0_i32, %c0_i32_0 : i32, i32, i32
  }
  func.func @transform_3(%arg0: i32, %arg1: i32) -> (i32, i32, i32) {
    %c0_i32 = arith.constant 0 : i32
    %c0_i32_0 = arith.constant 0 : i32
    %c0_i32_1 = arith.constant 0 : i32
    return %arg1, %c0_i32, %c0_i32_0 : i32, i32, i32
  }
  func.func @transform_4(%arg0: i32, %arg1: i32) -> (i32, i32, i32) {
    %c0_i32 = arith.constant 0 : i32
    %c0_i32_0 = arith.constant 0 : i32
    %c0_i32_1 = arith.constant 0 : i32
    return %arg1, %c0_i32, %c0_i32_0 : i32, i32, i32
  }
  func.func @transform_5(%arg0: i32, %arg1: i32) -> (i32, i32, i32) {
    %c0_i32 = arith.constant 0 : i32
    %c0_i32_0 = arith.constant 0 : i32
    %c0_i32_1 = arith.constant 0 : i32
    return %arg1, %c0_i32, %c0_i32_0 : i32, i32, i32
  }
  func.func @transform_6(%arg0: i32, %arg1: i32) -> (i32, i32, i32) {
    %c0_i32 = arith.constant 0 : i32
    %c0_i32_0 = arith.constant 0 : i32
    %c0_i32_1 = arith.constant 0 : i32
    return %arg1, %c0_i32, %c0_i32_0 : i32, i32, i32
  }
  func.func @transform_7(%arg0: i32, %arg1: i32) -> (i32, i32, i32) {
    %c0_i32 = arith.constant 0 : i32
    %c0_i32_0 = arith.constant 0 : i32
    %c0_i32_1 = arith.constant 0 : i32
    return %arg1, %c0_i32, %c0_i32_0 : i32, i32, i32
  }
  func.func @transform_8(%arg0: i32, %arg1: i32) -> (i32, i32, i32) {
    %c0_i32 = arith.constant 0 : i32
    %c0_i32_0 = arith.constant 0 : i32
    %c0_i32_1 = arith.constant 0 : i32
    return %arg1, %c0_i32, %c0_i32_0 : i32, i32, i32
  }
  func.func @transform_9(%arg0: i32, %arg1: i32) -> (i32, i32, i32) {
    %c0_i32 = arith.constant 0 : i32
    %c0_i32_0 = arith.constant 0 : i32
    %c0_i32_1 = arith.constant 0 : i32
    return %arg1, %c0_i32, %c0_i32_0 : i32, i32, i32
  }
  func.func @transform_10(%arg0: i32, %arg1: i32) -> (i32, i32, i32) {
    %c0_i32 = arith.constant 0 : i32
    %c0_i32_0 = arith.constant 0 : i32
    %c0_i32_1 = arith.constant 0 : i32
    return %arg1, %c0_i32, %c0_i32_0 : i32, i32, i32
  }
  func.func @transform_11(%arg0: i32, %arg1: i32) -> (i32, i32, i32) {
    %c0_i32 = arith.constant 0 : i32
    %c0_i32_0 = arith.constant 0 : i32
    %c0_i32_1 = arith.constant 0 : i32
    return %arg1, %c0_i32, %c0_i32_0 : i32, i32, i32
  }
  func.func @transform_12(%arg0: i32, %arg1: i32) -> (i32, i32, i32) {
    %c0_i32 = arith.constant 0 : i32
    %c0_i32_0 = arith.constant 0 : i32
    %c0_i32_1 = arith.constant 0 : i32
    return %arg1, %c0_i32, %c0_i32_0 : i32, i32, i32
  }
  func.func @transform_13(%arg0: i32, %arg1: i32) -> (i32, i32) {
    %c0_i32 = arith.constant 0 : i32
    %c0_i32_0 = arith.constant 0 : i32
    %c0_i32_1 = arith.constant 0 : i32
    return %c0_i32, %c0_i32_0 : i32, i32
  }
  func.func @transform_14(%arg0: i32, %arg1: i32) -> (i32, i32) {
    %c0_i32 = arith.constant 0 : i32
    %c0_i32_0 = arith.constant 0 : i32
    %c0_i32_1 = arith.constant 0 : i32
    return %c0_i32, %c0_i32_0 : i32, i32
  }
  func.func @transform_15(%arg0: i32, %arg1: i32) -> (i32, i32, i32) {
    %c0_i32 = arith.constant 0 : i32
    %c0_i32_0 = arith.constant 0 : i32
    %c0_i32_1 = arith.constant 0 : i32
    return %arg0, %c0_i32, %c0_i32_0 : i32, i32, i32
  }
}

</mosaic_0001>

<bundles_post_ra>
// kernel: tpu_custom_call.1
= control target key start
LH: loop header
LB: loop body
LE: loop exit
PB: predicated region body
PF: predicated region fallthrough
CT: control target
= control target key end

     0   :  { %s5161_s0 = inlined_call_operand.hbm [shape: f32[2,8,32], index: 0, kind: input, shape index: {}]   ;;  %s5162_s1 = inlined_call_operand.vmem [shape: f32[2,1,32], index: 1, kind: input, shape index: {}]   ;;  %s5163_s2 = inlined_call_operand.vmem [shape: f32[2,1,32], index: 2, kind: input, shape index: {}]   ;;  %s5164_s3 = inlined_call_operand.vmem [shape: f32[2,32,96], index: 3, kind: input, shape index: {}]   ;;  %s5165_s4 = inlined_call_operand.vmem [shape: f32[2,1,96], index: 4, kind: input, shape index: {}]   ;;  %s5166_s5 = inlined_call_operand.vmem [shape: f32[2,32,32], index: 5, kind: input, shape index: {}]   ;;  %s5167_s6 = inlined_call_operand.vmem [shape: f32[2,1,32], index: 6, kind: input, shape index: {}]   ;;  %s5168_s7 = inlined_call_operand.vmem [shape: f32[2,1,32], index: 7, kind: input, shape index: {}]   ;;  %s5169_s8 = inlined_call_operand.vmem [shape: f32[2,1,32], index: 8, kind: input, shape index: {}]   ;;  %s5170_s9 = inlined_call_operand.vmem [shape: f32[2,32,64], index: 9, kind: input, shape index: {}]   ;;  %s5171_s10 = inlined_call_operand.vmem [shape: f32[2,1,64], index: 10, kind: input, shape index: {}]   ;;  %s5172_s11 = inlined_call_operand.vmem [shape: f32[2,64,32], index: 11, kind: input, shape index: {}]   ;;  %s5173_s12 = inlined_call_operand.vmem [shape: f32[2,1,32], index: 12, kind: input, shape index: {}]   ;;  %s5174_s13 = inlined_call_operand.vmem [shape: f32[1,32], index: 13, kind: input, shape index: {}]   ;;  %s5175_s14 = inlined_call_operand.vmem [shape: f32[1,32], index: 14, kind: input, shape index: {}]   ;;  %s5176_s15 = inlined_call_operand.hbm [shape: f32[2,8,32], index: 15, kind: output, shape index: {}]  }
   0x1   :  { %5184 = sst [smem:[#allocation13_spill]] %s5161_s0 }
   0x2   :  { %5185 = sst [smem:[#allocation14_spill]] %s5164_s3 }
   0x3   :  { %5186 = sst [smem:[#allocation15_spill]] %s5166_s5 }
   0x4   :  { %5187 = sst [smem:[#allocation16_spill]] %s5174_s13 }
   0x5   :  { %5188 = sst [smem:[#allocation17_spill]] %s5175_s14 }
   0x6   :  { %5189 = sst [smem:[#allocation18_spill]] %s5176_s15 }
   0x7   :  { %20 = vsyncpa [#allocation5], 0 }
   0x8   :  { %21 = vsyncpa [#allocation6], 0  ;;  %s4544_s18 = smov 0   ;;  %s4546_s19 = smov 0  }
   0x9   :  { %s4548_s20 = smov 0  }
   0xa LB: > { %5190 = sst [smem:[#allocation10_spill]] %s4441_s19  ;;  %s5177_s21 = sadd.s32 4294967295, %s4445_s20   ;;  %s4445_s20 = sphi %s4548_s20, %s27_s20   ;;  %s4441_s19 = sphi %s4546_s19, %s5213_s19   ;;  %s4437_s18 = sphi %s4544_s18, %s5212_s18  }
   0xb   : > { %5191 = sst [smem:[#allocation11_spill]] %s4445_s20  ;;  %s36_s22 = sadd.s32 1, %s4441_s19 }
   0xc   : > { %p37_p0 = scmp.ge.s32.totalorder %s36_s22, 2  ;;  %p3937_p1 = scmp.ge.s32.totalorder %s4445_s20, 1 }
   0xd   : > { %p450_p2 = scmp.lt.s32.totalorder %s4445_s20, 3  ;;  %p4571_p4 = scmp.eq.s32.totalorder %s5177_s21, 0 }
   0xe   : > { %s5215_s22 = smov (%p37_p0, %s36_s22), 0  ;;  %s4447_s25 = smov [#allocation4]  }
   0xf   : > { %5192 = sst [smem:[#allocation12_spill]] %s5215_s22  ;;  %p4565_p3 = pnand %p3937_p1, %p450_p2 }
  0x10   : > { %s5194_s24 = scalar_select %p4571_p4, 1, 0 }
  0x11   : > { %s5193_s23 = scalar_select %p4565_p3, 1, 0 }
  0x12   : > { %p4258_p5 = pneg %p4565_p3  ;;  %s465_s26 = sshll.u32 %s4447_s25, 4  ;;  %s466_s26 = int_to_ptr.vmem [resolvable:$true] %s465_s26 }
  0x13   : > { %s5196_s0 = sld [smem:[#allocation13_spill]] }
  0x14   : > { %p4579_p6 = pnand %p4571_p4, %p4258_p5 }
  0x16   : > { %p4363_p8 = pneg %p4579_p6 }
  0x19   : > { %s4361_s30 = scalar_lea.hbm %s5196_s0, 256 }
  0x1a   : > { %p4362_p7 = scmp.ne.s32.totalorder %s5196_s0, %s4361_s30  ;;  %p4368_p11 = scmp.lt.u32.totalorder %s4361_s30, %s5196_s0 }
  0x1c   : > { %p4364_p9 = pnand %p4363_p8, %p4362_p7 }
  0x1e   : > { %p4365_p10 = pneg %p4364_p9 }
  0x20   : > { %p4370_p12 = pnand %p4368_p11, %p4365_p10 }
  0x22   : > { %4373 = shalt.err (!%p4370_p12)
}
  0x23   : > { %s4374_s22 = scalar_lea.vmem %s466_s26, 256  ;;  %p4382_p2 = scmp.lt.s32.totalorder %s466_s26, %s466_s26 }
  0x24   : > { %p4375_p13 = scmp.ne.s32.totalorder %s466_s26, %s4374_s22  ;;  %p4383_p5 = scmp.lt.s32.totalorder %s4374_s22, %s4374_s22 }
  0x26   : > { %p4377_p0 = pnand %p4375_p13, %p4363_p8  ;;  %p4384_p4 = por %p4383_p5, %p4382_p2 }
  0x28   : > { %p4378_p1 = pneg %p4377_p0 }
  0x2a   : > { %p4385_p3 = pnand %p4384_p4, %p4378_p1 }
  0x2c   : > { %4388 = shalt.err (!%p4385_p3)
}
  0x2d   : > { %s4448_s28 = smov 128   ;;  %s4449_s29 = smov 8  }
  0x2e   : > { %4261 = dma.hbm_to_vmem [thread:$0]  (!%p4579_p6), %s5196_s0, 256, %s466_s26, [#allocation5], %s4448_s28, %s4448_s28, %s4449_s29  }
  0x2f   : > { %p5197_p7 = scmp.ne.s32.totalorder %s5193_s23, 0 }
  0x30   : > { %p5198_p9 = scmp.ne.s32.totalorder (!%p5197_p7), %s5194_s24, 0 }
  0x31   : > { %567 = sbr.rel (%p5197_p7) target bundleno = 3748 (0xea4), region = 80 }
  0x38   : > { %4428 = dma.done.wait (%p5198_p9), [#allocation5], 256  }
  0x39   : > { %4430 = vsyncadd (%p5198_p9), [#allocation5], 4294967040  ;;  %p650_p3 = scmp.lt.s32.totalorder %s4437_s18, 1  ;;  %s5199_s3 = sld [smem:[#allocation14_spill]] }
  0x3a   : > { %s5200_s5 = sld [smem:[#allocation15_spill]]  ;;  %p3950_p4 = scmp.ne.s32.totalorder %s4437_s18, 0 }
  0x3b   : > { %s4607_s21 = scalar_select %p650_p3, %s4437_s18, 1 }
  0x3c   : > { %698 = sbr.rel (%p3950_p4) target bundleno = 67 (0x43), region = 88  ;;  %v699_v0 = vld [vmem:[#allocation4] sm:$0xff] (!%p3950_p4)  ;;  %vm701_vm0 = vcmask (!%p3950_p4), 261120   ;;  %v700_v1 = vld [vmem:[#allocation4 + $0x8] sm:$0xff] (!%p3950_p4) }
  0x3d   : > { %s4014_s25 = sshll.u32 %s4607_s21, 5  ;;  %s674_s14 = scalar_lea.vmem %s5168_s7, %s4607_s21  ;;  %702 = vst.msk [vmem:[#allocation2] sm:$0xff] (!%p3950_p4), %vm701_vm0, %v699_v0  ;;  %703 = vst.msk [vmem:[#allocation2 + $0x8] sm:$0xff] (!%p3950_p4), %vm701_vm0, %v700_v1 }
  0x3e   : > { %s677_s16 = scalar_lea.vmem %s5169_s8, %s4607_s21  ;;  %s4017_s13 = sshll.u32 %s4607_s21, 6 }
  0x3f   : > { %s4625_s27 = scalar_lea.vmem %s5199_s3, %s4014_s25  ;;  %s4647_s3 = scalar_lea.vmem %s5170_s9, %s4014_s25 }
  0x40   : > { %s4630_s15 = scalar_lea.vmem %s5200_s5, %s4014_s25  ;;  %s685_s5 = scalar_lea.vmem %s5171_s10, %s4607_s21 }
  0x41   : > { %s4657_s24 = scalar_lea.vmem %s5172_s11, %s4017_s13  ;;  %s693_s28 = scalar_lea.vmem %s5173_s12, %s4607_s21 }
  0x43 PF: > { %vm708_vm1 = vcmask 261120   ;;  %v752_v16 = vld [vmem:[%s4625_s27] sm:$0xff]  ;;  %v753_v17 = vld [vmem:[%s4625_s27 + $0x8] sm:$0xff]  ;;  %v754_v18 = vld [vmem:[%s4625_s27 + $0x10] sm:$0xff]  ;;  %s5202_s22 = scalar_lea.vmem %s5163_s2, %s4607_s21  ;;  %s5203_s20 = scalar_lea.vmem %s5165_s4, %s4607_s21  ;;  %v4454_v46 = vmov 0.0   ;;  %vm4455_vm2 = vmmov 0   ;;  %v859_v49 = vlaneseq }
  0x44   : > { %v704_v2 = vld [vmem:[#allocation2] sm:$0xff]  ;;  %v705_v3 = vld [vmem:[#allocation2 + $0x8] sm:$0xff]  ;;  %v4210_v19 = vpack.c.bf16 %v753_v17, %v752_v16  ;;  %v755_v20 = vld [vmem:[%s4625_s27 + $0x18] sm:$0xff]  ;;  %s5201_s27 = scalar_lea.vmem %s5162_s1, %s4607_s21  ;;  %s4450_s23 = smov 112   ;;  %4099 = vmatprep.subr.mxu0 %v4454_v46  ;;  %4101 = vmatprep.mubr.msk.f32.mxu0 %vm4455_vm2, %v4454_v46  ;;  %v4456_v47 = vmov 1983009808  }
  0x45   : > { %v709_v4 = vsel %vm708_vm1, %v704_v2, 0.0  ;;  %v712_v5 = vsel %vm708_vm1, %v705_v3, 0.0  ;;  %v4214_v21 = vpack.c.bf16 %v755_v20, %v754_v18  ;;  %v3951_v29 = vld [vmem:[%s5201_s27] ss:$0 sm:$0xff]  ;;  %s4451_s30 = smov 120   ;;  %s4452_s26 = smov 104   ;;  %v857_v48 = vunpack.c.l.s4 %v4456_v47 }
  0x46   : > { %710 = vadd.xlane.f32.xlu0 %v709_v4  ;;  %4211 = vmatprep.subr.bf16.mxu1 %v4210_v19  ;;  %v3952_v31 = vld [vmem:[%s5202_s22] ss:$0 sm:$0xff]  ;;  %s4453_s13 = smov 96   ;;  %v860_v51 = vshrl.u32 %v859_v49, 7  ;;  %v4457_v52 = vmov 1934713408   ;;  %s5204_s0 = scalar_lea.vmem %s5167_s6, %s4607_s21 }
  0x47   : > { %4213 = vmatpush3.bf16.msra.mxu1 %v4210_v19  ;;  %v3953_v38 = vld [vmem:[%s5203_s20] ss:$0 sm:$0xff]  ;;  %v858_v50 = vunpack.c.0.s8 %v857_v48  ;;  %v889_v53 = vunpack.c.l.s4 %v4457_v52  ;;  %vm1286_vm3 = vcmask 64512   ;;  %s4458_s25 = smov 64   ;;  %s4459_s27 = smov 8   ;;  %vm2076_vm4 = vcmask 130048  }
  0x48   : > { %4215 = vmatprep.subr.bf16.mxu1 %v4214_v21  ;;  %s4460_s29 = smov 16   ;;  %s4461_s17 = smov 24   ;;  %vm2078_vm5 = vcmask 195584   ;;  %vm3616_vm8 = vcmask 523264  }
  0x49   : > { %v4723_v56 = vsub.s32 %v858_v50, %v860_v51  ;;  %v890_v59 = vunpack.c.0.s8 %v889_v53  ;;  %p4007_p6 = scmp.ne.s32.totalorder %s4437_s18, 1 }
  0x4a   : > { %713 = vadd.xlane.f32.xlu0 %v712_v5 }
  0x4b   : > { %4217 = vmatpush3.bf16.msra.mxu1 %v4214_v21  ;;  %v4733_v1 = vsub.s32 %v890_v59, %v860_v51 }
  0x4c   : > { %4089 = vmatprep.subr.mxu1 %v4454_v46 }
  0xd3   : > { %v711_v6 = vpop.xlane.xlu0 %710 }
  0xd4   : > { %v716_v7 = vmul.f32 0.03125, %v711_v6 }
  0xd6   : > { %v718_v8 = vsub.f32 %v704_v2, %v716_v7 }
  0xd7   : > { %v714_v9 = vpop.xlane.xlu0 %713 }
  0xd8   : > { %v717_v10 = vmul.f32 0.03125, %v714_v9  ;;  %v720_v11 = vmul.f32 %v718_v8, %v718_v8 }
  0xda   : > { %v719_v12 = vsub.f32 %v705_v3, %v717_v10  ;;  %v722_v13 = vsel %vm708_vm1, %v720_v11, 0.0 }
  0xdb   : > { %723 = vadd.xlane.f32.xlu1 %v722_v13 }
  0xdc   : > { %v721_v14 = vmul.f32 %v719_v12, %v719_v12 }
  0xde   : > { %v725_v15 = vsel %vm708_vm1, %v721_v14, 0.0 }
  0xdf   : > { %726 = vadd.xlane.f32.xlu1 %v725_v15 }
 0x168   : > { %v724_v22 = vpop.xlane.xlu1 %723 }
 0x169   : > { %v728_v23 = vmul.f32 0.03125, %v724_v22 }
 0x16b   : > { %v730_v24 = vadd.f32 1e-06, %v728_v23 }
 0x16c   : > { %v727_v25 = vpop.xlane.xlu1 %726 }
 0x16d   : > { %4307 = vrsqrt.f32 %v730_v24  ;;  %v729_v26 = vmul.f32 0.03125, %v727_v25 }
 0x16f   : > { %v731_v27 = vadd.f32 1e-06, %v729_v26 }
 0x171   : > { %4309 = vrsqrt.f32 %v731_v27 }
 0x177   : > { %v4308_v28 = vpop.eup %4307 }
 0x178   : > { %v734_v30 = vmul.f32 %v4308_v28, %v718_v8 }
 0x17a   : > { %v742_v32 = vmul.f32 %v3951_v29, %v734_v30 }
 0x17b   : > { %v4310_v33 = vpop.eup %4309 }
 0x17c   : > { %v735_v34 = vmul.f32 %v4310_v33, %v719_v12  ;;  %v750_v35 = vadd.f32 %v3952_v31, %v742_v32 }
 0x17e   : > { %v743_v36 = vmul.f32 %v3951_v29, %v735_v34  ;;  %4086 = vmatprep.mubr.msk.f32.mxu1 %vm708_vm1, %v750_v35 }
 0x180   : > { %v751_v37 = vadd.f32 %v3952_v31, %v743_v36 }
 0x182   : > { %4087 = vmatmul.mubr.msk.f32.vlgmr.msra.gmra.mrb[0].mxu1 %vm708_vm1, %v751_v37 }
 0x183   : > { %4091 = vmatprep.mubr.msk.f32.mxu1 %vm4455_vm2, %v4454_v46 }
 0x255   : > { %v4088_v39 = vpop.f32.mrb[0].mxu1 }
 0x256   : > { %v4689_v40 = vadd.f32 %v4088_v39, %v3953_v38  ;;  %v835_v41 = vpop.f32.mrb[1].mxu1 }
 0x257   : > { %v4691_v42 = vadd.f32 %v3953_v38, %v835_v41 }
 0x259   : > { %848 = vrot.lane.b32.xlu1 %v4691_v42, %s4450_s23  ;;  %845 = vrot.lane.b32.xlu0 %v4691_v42, %s4451_s30 }
 0x25d   : > { %851 = vrot.lane.b32.xlu1 %v4691_v42, %s4452_s26 }
 0x261   : > { %990 = vrot.lane.b32.xlu1 %v4691_v42, %s4453_s13 }
 0x2cb   : > { %v4701_v43 = vpop.permute.xlu1 %848  ;;  %v4703_v44 = vpop.permute.xlu0 %845 }
 0x2cc   : > { %994 = vrot.lane.b32.xlu1 %v4701_v43, %s4453_s13  ;;  %992 = vrot.lane.b32.xlu0 %v4703_v44, %s4453_s13  ;;  %v854_v57 = vcombine.low %v4691_v42, %v4701_v43  ;;  %v855_v58 = vcombine.high %v4691_v42, %v4701_v43 }
 0x2ce   : > { %v862_v63 = vrot.slane %v854_v57, %v4723_v56  ;;  %v869_v0 = vrot.slane %v855_v58, %v4723_v56 }
 0x2cf   : > { %v4709_v45 = vpop.permute.xlu1 %851 }
 0x2d0   : > { %996 = vrot.lane.b32.xlu0 %v4709_v45, %s4453_s13  ;;  %v870_v54 = vcombine.low %v4703_v44, %v4709_v45  ;;  %v871_v55 = vcombine.high %v4703_v44, %v4709_v45 }
 0x2d2   : > { %v878_v60 = vrot.slane %v870_v54, %v4723_v56  ;;  %v885_v61 = vrot.slane %v871_v55, %v4723_v56 }
 0x2d3   : > { %v991_v62 = vpop.permute.xlu1 %990 }
 0x2d4   : > { %v886_v2 = vcombine.low %v862_v63, %v878_v60  ;;  %v887_v3 = vcombine.high %v862_v63, %v878_v60  ;;  %v902_v4 = vcombine.low %v869_v0, %v885_v61  ;;  %v903_v5 = vcombine.high %v869_v0, %v885_v61 }
 0x2d6   : > { %v894_v10 = vrot.slane %v886_v2, %v4733_v1  ;;  %v901_v11 = vrot.slane %v887_v3, %v4733_v1  ;;  %v910_v12 = vrot.slane %v902_v4, %v4733_v1  ;;  %v917_v13 = vrot.slane %v903_v5, %v4733_v1 }
 0x2d8   : > { %v922_v21 = vcombine.low %v894_v10, %v901_v11  ;;  %v3956_v22 = vcombine.high %v894_v10, %v901_v11  ;;  %v938_v23 = vcombine.low %v910_v12, %v917_v13  ;;  %v3957_v24 = vcombine.high %v910_v12, %v917_v13 }
 0x2da   : > { %v929_v33 = vrot.slane %v922_v21, %v4723_v56  ;;  %v937_v34 = vrot.slane %v3956_v22, %v4723_v56  ;;  %v945_v35 = vrot.slane %v938_v23, %v4723_v56  ;;  %v953_v36 = vrot.slane %v3957_v24, %v4723_v56 }
 0x2dc   : > { %v954_v51 = vcombine.low %v929_v33, %v937_v34  ;;  %v970_v52 = vcombine.low %v945_v35, %v953_v36  ;;  %v955_v53 = vcombine.high %v929_v33, %v937_v34  ;;  %v971_v54 = vcombine.high %v945_v35, %v953_v36 }
 0x2de   : > { %v962_v0 = vrot.slane %v954_v51, %v4733_v1  ;;  %v978_v2 = vrot.slane %v970_v52, %v4733_v1  ;;  %v969_v3 = vrot.slane %v955_v53, %v4733_v1  ;;  %v985_v4 = vrot.slane %v971_v54, %v4733_v1 }
 0x2e0   : > { %v987_v10 = vcombine.high %v962_v0, %v978_v2  ;;  %v989_v12 = vcombine.high %v969_v3, %v985_v4 }
 0x33e   : > { %v995_v6 = vpop.permute.xlu1 %994  ;;  %v993_v7 = vpop.permute.xlu0 %992 }
 0x33f   : > { %v1002_v8 = vcombine.low %v991_v62, %v995_v6  ;;  %v1003_v9 = vcombine.high %v991_v62, %v995_v6 }
 0x341   : > { %v1010_v17 = vrot.slane %v1002_v8, %v4723_v56  ;;  %v1017_v18 = vrot.slane %v1003_v9, %v4723_v56  ;;  %v988_v8 = vcombine.low %v969_v3, %v985_v4 }
 0x342   : > { %v997_v14 = vpop.permute.xlu0 %996 }
 0x343   : > { %v1018_v15 = vcombine.low %v993_v7, %v997_v14  ;;  %v1019_v16 = vcombine.high %v993_v7, %v997_v14  ;;  %v986_v7 = vcombine.low %v962_v0, %v978_v2 }
 0x345   : > { %v1026_v19 = vrot.slane %v1018_v15, %v4723_v56  ;;  %v1033_v20 = vrot.slane %v1019_v16, %v4723_v56 }
 0x347   : > { %v1034_v25 = vcombine.low %v1010_v17, %v1026_v19  ;;  %v1035_v26 = vcombine.high %v1010_v17, %v1026_v19  ;;  %v1050_v27 = vcombine.low %v1017_v18, %v1033_v20  ;;  %v1051_v28 = vcombine.high %v1017_v18, %v1033_v20 }
 0x349   : > { %v1042_v29 = vrot.slane %v1034_v25, %v4733_v1  ;;  %v1049_v30 = vrot.slane %v1035_v26, %v4733_v1  ;;  %v1058_v31 = vrot.slane %v1050_v27, %v4733_v1  ;;  %v1065_v32 = vrot.slane %v1051_v28, %v4733_v1 }
 0x34b   : > { %v1070_v37 = vcombine.low %v1042_v29, %v1049_v30  ;;  %v3958_v38 = vcombine.high %v1042_v29, %v1049_v30  ;;  %v1086_v39 = vcombine.low %v1058_v31, %v1065_v32  ;;  %v3959_v41 = vcombine.high %v1058_v31, %v1065_v32 }
 0x34d   : > { %v1077_v47 = vrot.slane %v1070_v37, %v4723_v56  ;;  %v1085_v48 = vrot.slane %v3958_v38, %v4723_v56  ;;  %v1093_v49 = vrot.slane %v1086_v39, %v4723_v56  ;;  %v1101_v50 = vrot.slane %v3959_v41, %v4723_v56 }
 0x34f   : > { %v1102_v55 = vcombine.low %v1077_v47, %v1085_v48  ;;  %v1118_v57 = vcombine.low %v1093_v49, %v1101_v50  ;;  %v1103_v58 = vcombine.high %v1077_v47, %v1085_v48  ;;  %v1119_v59 = vcombine.high %v1093_v49, %v1101_v50 }
 0x351   : > { %v1110_v60 = vrot.slane %v1102_v55, %v4733_v1  ;;  %v1126_v61 = vrot.slane %v1118_v57, %v4733_v1  ;;  %v1117_v62 = vrot.slane %v1103_v58, %v4733_v1  ;;  %v1133_v63 = vrot.slane %v1119_v59, %v4733_v1 }
 0x353   : > { %v1134_v5 = vcombine.low %v1110_v60, %v1126_v61  ;;  %v1136_v6 = vcombine.low %v1117_v62, %v1133_v63  ;;  %v1135_v9 = vcombine.high %v1110_v60, %v1126_v61  ;;  %v1137_v11 = vcombine.high %v1117_v62, %v1133_v63 }
 0x355   : > { %4090 = vmatpush3.xpose.msk.msra.mxu1 %vm1286_vm3, %v1134_v5  ;;  %4100 = vmatpush3.xpose.msk.msra.mxu0 %vm1286_vm3, %v1136_v6 }
 0x356   : > { %4094 = vmatprep.subr.mxu1 %v4454_v46  ;;  %4109 = vmatprep.subr.mxu0 %v4454_v46 }
 0x358   : > { %4092 = vmatmul.mubr.msk.f32.vlgmr.msra.gmra.mrb[2].mxu1 %vm1286_vm3, %v986_v7  ;;  %4102 = vmatmul.mubr.msk.f32.vlgmr.msra.gmra.mrb[0].mxu0 %vm1286_vm3, %v988_v8 }
 0x359   : > { %4095 = vmatpush3.xpose.msk.msra.mxu1 %vm1286_vm3, %v1135_v9  ;;  %4096 = vmatprep.mubr.msk.f32.mxu1 %vm4455_vm2, %v4454_v46 }
 0x35a   : > { %4104 = vmatprep.subr.mxu1 %v4454_v46  ;;  %4111 = vmatprep.mubr.msk.f32.mxu0 %vm4455_vm2, %v4454_v46 }
 0x35c   : > { %4097 = vmatmul.mubr.msk.f32.vlgmr.msra.gmra.mrb[4].mxu1 %vm1286_vm3, %v987_v10 }
 0x35d   : > { %4105 = vmatpush3.xpose.msk.msra.mxu1 %vm1286_vm3, %v1137_v11  ;;  %4106 = vmatprep.mubr.msk.f32.mxu1 %vm4455_vm2, %v4454_v46 }
 0x35e   : > { %4114 = vmatprep.subr.mxu1 %v4454_v46 }
 0x360   : > { %4107 = vmatmul.mubr.msk.f32.vlgmr.msra.gmra.mrb[6].mxu1 %vm1286_vm3, %v989_v12 }
 0x361   : > { %4116 = vmatprep.mubr.msk.f32.mxu1 %vm4455_vm2, %v4454_v46 }
 0x42b   : > { %v1359_v13 = vpop.f32.mrb[2].mxu1  ;;  %v1511_v14 = vpop.f32.mrb[0].mxu0 }
 0x42c   : > { %v4093_v15 = vpop.f32.mrb[3].mxu1  ;;  %v4103_v16 = vpop.f32.mrb[1].mxu0  ;;  %v1591_v17 = vsel %vm1286_vm3, %v1359_v13, -inf  ;;  %v1597_v23 = vsel %vm1286_vm3, %v1511_v14, -inf }
 0x42d   : > { %1592 = vmax.xlane.f32.xlu1 %v1591_v17 }
 0x42f   : > { %v1435_v18 = vpop.f32.mrb[4].mxu1 }
 0x430   : > { %v4098_v19 = vpop.f32.mrb[5].mxu1  ;;  %v1594_v20 = vsel %vm1286_vm3, %v1435_v18, -inf }
 0x431   : > { %1595 = vmax.xlane.f32.xlu0 %v1594_v20 }
 0x433   : > { %v1587_v21 = vpop.f32.mrb[6].mxu1 }
 0x434   : > { %v4108_v22 = vpop.f32.mrb[7].mxu1  ;;  %v1600_v24 = vsel %vm1286_vm3, %v1587_v21, -inf }
 0x435   : > { %1598 = vmax.xlane.f32.xlu0 %v1597_v23 }
 0x439   : > { %1601 = vmax.xlane.f32.xlu0 %v1600_v24 }
 0x43e   : > { %2082 = vrot.lane.b32.xlu1 %v4689_v40, %s4451_s30 }
 0x442   : > { %2088 = vrot.lane.b32.xlu1 %v4689_v40, %s4452_s26 }
 0x446   : > { %1140 = vrot.lane.b32.xlu1 %v4703_v44, %s4458_s25 }
 0x44a   : > { %1142 = vrot.lane.b32.xlu1 %v4701_v43, %s4458_s25 }
 0x44e   : > { %1144 = vrot.lane.b32.xlu1 %v4709_v45, %s4458_s25 }
 0x44f   : > { %2085 = vrot.lane.b32.xlu0 %v4689_v40, %s4450_s23 }
 0x453   : > { %1138 = vrot.lane.b32.xlu0 %v4691_v42, %s4458_s25 }
 0x457   : > { %2227 = vrot.lane.b32.xlu0 %v4689_v40, %s4453_s13 }
 0x4ba   : > { %v1593_v25 = vpop.xlane.xlu1 %1592 }
 0x4bb   : > { %v1603_v34 = vsub.f32 %v1359_v13, %v1593_v25 }
 0x4bd   : > { %v1607_v47 = vmul.f32 1.442695, %v1603_v34 }
 0x4be   : > { %v4803_v26 = vpop.permute.xlu1 %2082  ;;  %v1596_v27 = vpop.xlane.xlu0 %1595 }
 0x4bf   : > { %2229 = vrot.lane.b32.xlu1 %v4803_v26, %s4453_s13  ;;  %v1604_v28 = vsub.f32 %v1435_v18, %v1596_v27 }
 0x4c1   : > { %v1609_v32 = vmul.f32 1.442695, %v1604_v28 }
 0x4c2   : > { %v4807_v43 = vpop.permute.xlu1 %2088  ;;  %v1599_v44 = vpop.xlane.xlu0 %1598 }
 0x4c3   : > { %v1605_v45 = vsub.f32 %v1511_v14, %v1599_v44 }
 0x4c5   : > { %v1611_v29 = vmul.f32 1.442695, %v1605_v45 }
 0x4c6   : > { %v1141_v30 = vpop.permute.xlu1 %1140  ;;  %v1602_v31 = vpop.xlane.xlu0 %1601 }
 0x4c7   : > { %4311 = vpow2.f32 %v1611_v29  ;;  %v1606_v48 = vsub.f32 %v1587_v21, %v1602_v31 }
 0x4c8   : > { %4313 = vpow2.f32 %v1609_v32  ;;  %v2107_v32 = vcombine.low %v4803_v26, %v4807_v43 }
 0x4c9   : > { %4315 = vpow2.f32 %v1607_v47  ;;  %v1613_v59 = vmul.f32 1.442695, %v1606_v48 }
 0x4ca   : > { %v1143_v42 = vpop.permute.xlu1 %1142  ;;  %v4809_v33 = vpop.permute.xlu0 %2085 }
 0x4cb   : > { %4317 = vpow2.f32 %v1613_v59  ;;  %v2092_v31 = vcombine.high %v4689_v40, %v4809_v33 }
 0x4ce   : > { %v1145_v35 = vpop.permute.xlu1 %1144  ;;  %v1139_v36 = vpop.permute.xlu0 %1138 }
 0x4cf   : > { %v1166_v37 = vcombine.low %v1141_v30, %v1145_v35  ;;  %v1167_v38 = vcombine.high %v1141_v30, %v1145_v35  ;;  %v1150_v39 = vcombine.low %v1139_v36, %v1143_v42  ;;  %v1151_v41 = vcombine.high %v1139_v36, %v1143_v42 }
 0x4d0   : > { %v2091_v30 = vcombine.low %v4689_v40, %v4809_v33  ;;  %v2108_v42 = vcombine.high %v4803_v26, %v4807_v43  ;;  %v2106_v36 = vrot.slane %v2092_v31, %v4723_v56 }
 0x4d1   : > { %v1174_v49 = vrot.slane %v1166_v37, %v4723_v56  ;;  %v1181_v50 = vrot.slane %v1167_v38, %v4723_v56  ;;  %v1158_v51 = vrot.slane %v1150_v39, %v4723_v56  ;;  %v1165_v52 = vrot.slane %v1151_v41, %v4723_v56  ;;  %v4815_v53 = vpop.eup %4311 }
 0x4d2   : > { %v1621_v0 = vsel %vm1286_vm3, %v4815_v53, 0.0  ;;  %v4314_v2 = vpop.eup %4313  ;;  %v2228_v45 = vpop.permute.xlu0 %2227  ;;  %v2099_v35 = vrot.slane %v2091_v30, %v4723_v56  ;;  %v2115_v37 = vrot.slane %v2107_v32, %v4723_v56  ;;  %v2122_v38 = vrot.slane %v2108_v42, %v4723_v56 }
 0x4d3   : > { %v1182_v54 = vcombine.low %v1158_v51, %v1174_v49  ;;  %v1183_v55 = vcombine.high %v1158_v51, %v1174_v49  ;;  %v1198_v57 = vcombine.low %v1165_v52, %v1181_v50  ;;  %v1199_v58 = vcombine.high %v1165_v52, %v1181_v50  ;;  %1622 = vadd.xlane.f32.xlu0 %v1621_v0  ;;  %v4836_v20 = vpop.eup %4315 }
 0x4d4   : > { %v1618_v11 = vsel %vm1286_vm3, %v4314_v2, 0.0  ;;  %v1615_v25 = vsel %vm1286_vm3, %v4836_v20, 0.0  ;;  %v2123_v41 = vcombine.low %v2099_v35, %v2115_v37  ;;  %v2124_v47 = vcombine.high %v2099_v35, %v2115_v37 }
 0x4d5   : > { %v1190_v60 = vrot.slane %v1182_v54, %v4733_v1  ;;  %v1197_v61 = vrot.slane %v1183_v55, %v4733_v1  ;;  %v1206_v62 = vrot.slane %v1198_v57, %v4733_v1  ;;  %v1213_v63 = vrot.slane %v1199_v58, %v4733_v1  ;;  %v4844_v27 = vpop.eup %4317 }
 0x4d6   : > { %v1624_v44 = vsel %vm1286_vm3, %v4844_v27, 0.0  ;;  %v2139_v48 = vcombine.low %v2106_v36, %v2122_v38  ;;  %v2140_v49 = vcombine.high %v2106_v36, %v2122_v38  ;;  %v2131_v55 = vrot.slane %v2123_v41, %v4733_v1 }
 0x4d7   : > { %v1218_v3 = vcombine.low %v1190_v60, %v1197_v61  ;;  %v3960_v4 = vcombine.high %v1190_v60, %v1197_v61  ;;  %v1234_v5 = vcombine.low %v1206_v62, %v1213_v63  ;;  %v3961_v6 = vcombine.high %v1206_v62, %v1213_v63  ;;  %1619 = vadd.xlane.f32.xlu0 %v1618_v11 }
 0x4d8   : > { %v2138_v57 = vrot.slane %v2124_v47, %v4733_v1  ;;  %v2147_v58 = vrot.slane %v2139_v48, %v4733_v1  ;;  %v2154_v59 = vrot.slane %v2140_v49, %v4733_v1 }
 0x4d9   : > { %v1225_v7 = vrot.slane %v1218_v3, %v4723_v56  ;;  %v1233_v8 = vrot.slane %v3960_v4, %v4723_v56  ;;  %v1241_v9 = vrot.slane %v1234_v5, %v4723_v56  ;;  %v1249_v10 = vrot.slane %v3961_v6, %v4723_v56 }
 0x4da   : > { %v3976_v3 = vcombine.high %v2131_v55, %v2138_v57  ;;  %v2175_v4 = vcombine.low %v2147_v58, %v2154_v59  ;;  %v3977_v5 = vcombine.high %v2147_v58, %v2154_v59 }
 0x4db   : > { %v1250_v12 = vcombine.low %v1225_v7, %v1233_v8  ;;  %v1266_v13 = vcombine.low %v1241_v9, %v1249_v10  ;;  %v1251_v14 = vcombine.high %v1225_v7, %v1233_v8  ;;  %v1267_v15 = vcombine.high %v1241_v9, %v1249_v10 }
 0x4dd   : > { %v1258_v16 = vrot.slane %v1250_v12, %v4733_v1  ;;  %v1274_v17 = vrot.slane %v1266_v13, %v4733_v1  ;;  %v4831_v18 = vrot.slane %v1251_v14, %v4733_v1  ;;  %v4834_v19 = vrot.slane %v1267_v15, %v4733_v1 }
 0x4df   : > { %v1282_v21 = vcombine.low %v1258_v16, %v1274_v17  ;;  %v1283_v22 = vcombine.high %v1258_v16, %v1274_v17  ;;  %v1285_v23 = vcombine.high %v4831_v18, %v4834_v19  ;;  %v1284_v24 = vcombine.low %v4831_v18, %v4834_v19 }
 0x4e1   : > { %4110 = vmatpush3.msra.mxu0 %v1282_v21  ;;  %4115 = vmatpush3.msra.mxu1 %v1283_v22  ;;  %v2174_v21 = vrot.slane %v3976_v3, %v4723_v56  ;;  %v2182_v22 = vrot.slane %v2175_v4, %v4723_v56 }
 0x4e2   : > { %4124 = vmatprep.subr.mxu1 %v4454_v46  ;;  %4119 = vmatprep.subr.mxu0 %v4454_v46 }
 0x4e3   : > { %1616 = vadd.xlane.f32.xlu1 %v1615_v25 }
 0x4e7   : > { %1625 = vadd.xlane.f32.xlu1 %v1624_v44 }
 0x4ed   : > { %2231 = vrot.lane.b32.xlu0 %v4809_v33, %s4453_s13 }
 0x4f8   : > { %2233 = vrot.lane.b32.xlu1 %v4807_v43, %s4453_s13  ;;  %s5206_s13 = sld [smem:[#allocation17_spill]] (!%p4007_p6) }
 0x531   : > { %v2230_v34 = vpop.permute.xlu1 %2229 }
 0x560   : > { %v1623_v28 = vpop.xlane.xlu0 %1622 }
 0x564   : > { %v1620_v29 = vpop.xlane.xlu0 %1619 }
 0x565   : > { %4319 = vrcp.f32 %v1620_v29 }
 0x568   : > { %v2232_v51 = vpop.permute.xlu0 %2231 }
 0x569   : > { %v2239_v60 = vcombine.low %v2228_v45, %v2232_v51  ;;  %v2240_v61 = vcombine.high %v2228_v45, %v2232_v51 }
 0x56b   : > { %v2247_v7 = vrot.slane %v2239_v60, %v4723_v56  ;;  %v2254_v8 = vrot.slane %v2240_v61, %v4723_v56 }
 0x56f   : > { %v4320_v50 = vpop.eup %4319 }
 0x570   : > { %v1617_v39 = vpop.xlane.xlu1 %1616  ;;  %v1630_v54 = vmul.f32 %v4320_v50, %v4314_v2  ;;  %v2159_v2 = vcombine.low %v2131_v55, %v2138_v57 }
 0x571   : > { %4321 = vrcp.f32 %v1617_v39 }
 0x572   : > { %4323 = vrcp.f32 %v1623_v28  ;;  %4117 = vmatmul.mubr.msk.f32.vlgmr.msra.gmra.mrb[8].mxu1 %vm1286_vm3, %v1630_v54  ;;  %v2166_v17 = vrot.slane %v2159_v2, %v4723_v56 }
 0x573   : > { %4125 = vmatpush3.msra.mxu1 %v1285_v23  ;;  %4126 = vmatprep.mubr.msk.f32.mxu1 %vm4455_vm2, %v4454_v46  ;;  %v2190_v23 = vrot.slane %v3977_v5, %v4723_v56 }
 0x574   : > { %v1626_v52 = vpop.xlane.xlu1 %1625  ;;  %4134 = vmatprep.subr.mxu1 %v4454_v46  ;;  %v2191_v35 = vcombine.low %v2166_v17, %v2174_v21  ;;  %v2192_v50 = vcombine.high %v2166_v17, %v2174_v21 }
 0x575   : > { %4325 = vrcp.f32 %v1626_v52  ;;  %v2207_v18 = vcombine.low %v2182_v22, %v2190_v23  ;;  %v2208_v51 = vcombine.high %v2182_v22, %v2190_v23 }
 0x576   : > { %v2199_v48 = vrot.slane %v2191_v35, %v4733_v1  ;;  %v2206_v60 = vrot.slane %v2192_v50, %v4733_v1 }
 0x577   : > { %v2215_v49 = vrot.slane %v2207_v18, %v4733_v1  ;;  %v2222_v61 = vrot.slane %v2208_v51, %v4733_v1 }
 0x578   : > { %v2234_v62 = vpop.permute.xlu1 %2233 }
 0x579   : > { %v2255_v63 = vcombine.low %v2230_v34, %v2234_v62  ;;  %v2256_v0 = vcombine.high %v2230_v34, %v2234_v62  ;;  %v2223_v58 = vcombine.low %v2199_v48, %v2215_v49  ;;  %v2224_v59 = vcombine.high %v2199_v48, %v2215_v49 }
 0x57a   : > { %v2226_v2 = vcombine.high %v2206_v60, %v2222_v61 }
 0x57b   : > { %v4322_v6 = vpop.eup %4321  ;;  %v2263_v9 = vrot.slane %v2255_v63, %v4723_v56  ;;  %v2270_v10 = vrot.slane %v2256_v0, %v4723_v56  ;;  %v2225_v0 = vcombine.low %v2206_v60, %v2222_v61 }
 0x57c   : > { %v1628_v11 = vmul.f32 %v4322_v6, %v4836_v20  ;;  %v4324_v12 = vpop.eup %4323 }
 0x57d   : > { %v2271_v13 = vcombine.low %v2247_v7, %v2263_v9  ;;  %v2272_v14 = vcombine.high %v2247_v7, %v2263_v9  ;;  %v2287_v15 = vcombine.low %v2254_v8, %v2270_v10  ;;  %v2288_v16 = vcombine.high %v2254_v8, %v2270_v10 }
 0x57e   : > { %4112 = vmatmul.mubr.msk.f32.vlgmr.msra.gmra.mrb[2].mxu0 %vm1286_vm3, %v1628_v11  ;;  %v1632_v29 = vmul.f32 %v4324_v12, %v4815_v53 }
 0x57f   : > { %v4326_v25 = vpop.eup %4325  ;;  %v2279_v44 = vrot.slane %v2271_v13, %v4733_v1  ;;  %v2286_v20 = vrot.slane %v2272_v14, %v4733_v1  ;;  %v2295_v45 = vrot.slane %v2287_v15, %v4733_v1  ;;  %v2302_v28 = vrot.slane %v2288_v16, %v4733_v1  ;;  %4120 = vmatpush3.msra.mxu0 %v1284_v24 }
 0x580   : > { %v1634_v30 = vmul.f32 %v4326_v25, %v4844_v27  ;;  %4121 = vmatprep.mubr.msk.f32.mxu0 %vm4455_vm2, %v4454_v46  ;;  %4129 = vmatprep.subr.mxu0 %v4454_v46 }
 0x581   : > { %v2307_v31 = vcombine.low %v2279_v44, %v2286_v20  ;;  %v3978_v32 = vcombine.high %v2279_v44, %v2286_v20  ;;  %v2323_v42 = vcombine.low %v2295_v45, %v2302_v28  ;;  %v3979_v34 = vcombine.high %v2295_v45, %v2302_v28 }
 0x582   : > { %4122 = vmatmul.mubr.msk.f32.vlgmr.msra.gmra.mrb[4].mxu0 %vm1286_vm3, %v1632_v29  ;;  %4127 = vmatmul.mubr.msk.f32.vlgmr.msra.gmra.mrb[10].mxu1 %vm1286_vm3, %v1634_v30 }
 0x583   : > { %v2314_v19 = vrot.slane %v2307_v31, %v4723_v56  ;;  %v2322_v53 = vrot.slane %v3978_v32, %v4723_v56  ;;  %v2330_v24 = vrot.slane %v2323_v42, %v4723_v56  ;;  %v2338_v27 = vrot.slane %v3979_v34, %v4723_v56  ;;  %4131 = vmatprep.mubr.msk.f32.mxu0 %vm4455_vm2, %v4454_v46 }
 0x584   : > { %4136 = vmatprep.mubr.msk.f32.mxu1 %vm4455_vm2, %v4454_v46 }
 0x585   : > { %v2339_v36 = vcombine.low %v2314_v19, %v2322_v53  ;;  %v2340_v37 = vcombine.high %v2314_v19, %v2322_v53  ;;  %v2355_v38 = vcombine.low %v2330_v24, %v2338_v27  ;;  %v2356_v39 = vcombine.high %v2330_v24, %v2338_v27 }
 0x587   : > { %v2347_v41 = vrot.slane %v2339_v36, %v4733_v1  ;;  %v2363_v47 = vrot.slane %v2355_v38, %v4733_v1  ;;  %v2354_v55 = vrot.slane %v2340_v37, %v4733_v1  ;;  %v2370_v57 = vrot.slane %v2356_v39, %v4733_v1 }
 0x589   : > { %v2371_v52 = vcombine.low %v2347_v41, %v2363_v47  ;;  %v2372_v54 = vcombine.high %v2347_v41, %v2363_v47  ;;  %v2373_v62 = vcombine.low %v2354_v55, %v2370_v57  ;;  %v2374_v63 = vcombine.high %v2354_v55, %v2370_v57 }
 0x58b   : > { %4130 = vmatpush3.xpose.msk.msra.mxu0 %vm1286_vm3, %v2371_v52  ;;  %4135 = vmatpush3.xpose.msk.msra.mxu1 %vm1286_vm3, %v2372_v54 }
 0x58c   : > { %4139 = vmatprep.subr.mxu0 %v4454_v46  ;;  %4144 = vmatprep.subr.mxu1 %v4454_v46 }
 0x58e   : > { %4132 = vmatmul.mubr.msk.f32.vlgmr.msra.gmra.mrb[6].mxu0 %vm1286_vm3, %v2223_v58  ;;  %4137 = vmatmul.mubr.msk.f32.vlgmr.msra.gmra.mrb[12].mxu1 %vm1286_vm3, %v2224_v59 }
 0x58f   : > { %4140 = vmatpush3.xpose.msk.msra.mxu0 %vm1286_vm3, %v2373_v62  ;;  %4145 = vmatpush3.xpose.msk.msra.mxu1 %vm1286_vm3, %v2374_v63 }
 0x590   : > { %4141 = vmatprep.mubr.msk.f32.mxu0 %vm4455_vm2, %v4454_v46  ;;  %4146 = vmatprep.mubr.msk.f32.mxu1 %vm4455_vm2, %v4454_v46 }
 0x591   : > { %4149 = vmatprep.subr.mxu0 %v4454_v46  ;;  %4154 = vmatprep.subr.mxu1 %v4454_v46 }
 0x592   : > { %4142 = vmatmul.mubr.msk.f32.vlgmr.msra.gmra.mrb[8].mxu0 %vm1286_vm3, %v2225_v0  ;;  %4147 = vmatmul.mubr.msk.f32.vlgmr.msra.gmra.mrb[14].mxu1 %vm1286_vm3, %v2226_v2 }
 0x593   : > { %4151 = vmatprep.mubr.msk.f32.mxu0 %vm4455_vm2, %v4454_v46  ;;  %4156 = vmatprep.mubr.msk.f32.mxu1 %vm4455_vm2, %v4454_v46 }
 0x645   : > { %v1777_v3 = vpop.f32.mrb[8].mxu1 }
 0x646   : > { %v4118_v4 = vpop.f32.mrb[9].mxu1 }
 0x651   : > { %v1704_v5 = vpop.f32.mrb[2].mxu0 }
 0x652   : > { %v4113_v6 = vpop.f32.mrb[3].mxu0 }
 0x655   : > { %v1850_v7 = vpop.f32.mrb[4].mxu0  ;;  %v1923_v8 = vpop.f32.mrb[10].mxu1 }
 0x656   : > { %v1927_v9 = vcombine.low %v1704_v5, %v1850_v7  ;;  %v1928_v10 = vcombine.high %v1704_v5, %v1850_v7  ;;  %v1943_v11 = vcombine.low %v1777_v3, %v1923_v8  ;;  %v1944_v12 = vcombine.high %v1777_v3, %v1923_v8  ;;  %v4123_v13 = vpop.f32.mrb[5].mxu0  ;;  %v4128_v14 = vpop.f32.mrb[11].mxu1 }
 0x658   : > { %v1935_v15 = vrot.slane %v1927_v9, %v4723_v56  ;;  %v1942_v16 = vrot.slane %v1928_v10, %v4723_v56  ;;  %v1951_v17 = vrot.slane %v1943_v11, %v4723_v56  ;;  %v1958_v21 = vrot.slane %v1944_v12, %v4723_v56 }
 0x65a   : > { %v1959_v22 = vcombine.low %v1935_v15, %v1951_v17  ;;  %v1960_v23 = vcombine.high %v1935_v15, %v1951_v17  ;;  %v1975_v25 = vcombine.low %v1942_v16, %v1958_v21  ;;  %v1976_v44 = vcombine.high %v1942_v16, %v1958_v21 }
 0x65c   : > { %v1967_v20 = vrot.slane %v1959_v22, %v4733_v1  ;;  %v1974_v45 = vrot.slane %v1960_v23, %v4733_v1  ;;  %v1983_v28 = vrot.slane %v1975_v25, %v4733_v1  ;;  %v1990_v29 = vrot.slane %v1976_v44, %v4733_v1 }
 0x65e   : > { %v1995_v30 = vcombine.low %v1967_v20, %v1974_v45  ;;  %v3974_v31 = vcombine.high %v1967_v20, %v1974_v45  ;;  %v2011_v32 = vcombine.low %v1983_v28, %v1990_v29  ;;  %v3975_v42 = vcombine.high %v1983_v28, %v1990_v29 }
 0x660   : > { %v2002_v34 = vrot.slane %v1995_v30, %v4723_v56  ;;  %v2010_v35 = vrot.slane %v3974_v31, %v4723_v56  ;;  %v2018_v18 = vrot.slane %v2011_v32, %v4723_v56  ;;  %v2026_v19 = vrot.slane %v3975_v42, %v4723_v56 }
 0x661   : > { %v2595_v53 = vpop.f32.mrb[6].mxu0  ;;  %v2671_v24 = vpop.f32.mrb[12].mxu1 }
 0x662   : > { %v4133_v27 = vpop.f32.mrb[7].mxu0  ;;  %v4138_v36 = vpop.f32.mrb[13].mxu1  ;;  %v2827_v37 = vsel %vm1286_vm3, %v2595_v53, -inf  ;;  %v2830_v38 = vsel %vm1286_vm3, %v2671_v24, -inf  ;;  %v2027_v39 = vcombine.low %v2002_v34, %v2010_v35  ;;  %v2043_v41 = vcombine.low %v2018_v18, %v2026_v19 }
 0x663   : > { %2828 = vmax.xlane.f32.xlu0 %v2827_v37  ;;  %2831 = vmax.xlane.f32.xlu1 %v2830_v38  ;;  %v2028_v47 = vcombine.high %v2002_v34, %v2010_v35  ;;  %v2044_v48 = vcombine.high %v2018_v18, %v2026_v19 }
 0x664   : > { %v4949_v49 = vrot.slane %v2027_v39, %v4733_v1  ;;  %v4952_v50 = vrot.slane %v2043_v41, %v4733_v1 }
 0x665   : > { %v2747_v51 = vpop.f32.mrb[8].mxu0  ;;  %v2823_v52 = vpop.f32.mrb[14].mxu1  ;;  %v2042_v54 = vrot.slane %v2028_v47, %v4733_v1  ;;  %v2058_v55 = vrot.slane %v2044_v48, %v4733_v1 }
 0x666   : > { %v4143_v57 = vpop.f32.mrb[9].mxu0  ;;  %v4148_v58 = vpop.f32.mrb[15].mxu1  ;;  %v2833_v59 = vsel %vm1286_vm3, %v2747_v51, -inf  ;;  %v2060_v60 = vcombine.high %v4949_v49, %v4952_v50  ;;  %v2059_v61 = vcombine.low %v4949_v49, %v4952_v50  ;;  %v2836_v0 = vsel %vm1286_vm3, %v2823_v52, -inf }
 0x667   : > { %2834 = vmax.xlane.f32.xlu0 %v2833_v59  ;;  %v2061_v62 = vcombine.low %v2042_v54, %v2058_v55  ;;  %v2062_v63 = vcombine.high %v2042_v54, %v2058_v55 }
 0x66b   : > { %2837 = vmax.xlane.f32.xlu0 %v2836_v0 }
 0x6f0   : > { %v2829_v2 = vpop.xlane.xlu0 %2828  ;;  %v2832_v3 = vpop.xlane.xlu1 %2831 }
 0x6f1   : > { %v2839_v4 = vsub.f32 %v2595_v53, %v2829_v2  ;;  %v2840_v5 = vsub.f32 %v2671_v24, %v2832_v3 }
 0x6f3   : > { %v2843_v6 = vmul.f32 1.442695, %v2839_v4  ;;  %v2845_v7 = vmul.f32 1.442695, %v2840_v5 }
 0x6f4   : > { %v2835_v8 = vpop.xlane.xlu0 %2834 }
 0x6f5   : > { %4327 = vpow2.f32 %v2843_v6  ;;  %v2841_v9 = vsub.f32 %v2747_v51, %v2835_v8 }
 0x6f6   : > { %4329 = vpow2.f32 %v2845_v7 }
 0x6f7   : > { %v2847_v10 = vmul.f32 1.442695, %v2841_v9 }
 0x6f8   : > { %v2838_v17 = vpop.xlane.xlu0 %2837 }
 0x6f9   : > { %4331 = vpow2.f32 %v2847_v10  ;;  %v2842_v21 = vsub.f32 %v2823_v52, %v2838_v17 }
 0x6fb   : > { %v2849_v22 = vmul.f32 1.442695, %v2842_v21 }
 0x6fd   : > { %4333 = vpow2.f32 %v2849_v22 }
 0x6ff   : > { %v4962_v11 = vpop.eup %4327 }
 0x700   : > { %v4964_v12 = vpop.eup %4329  ;;  %v2851_v13 = vsel %vm1286_vm3, %v4962_v11, 0.0 }
 0x701   : > { %v2854_v14 = vsel %vm1286_vm3, %v4964_v12, 0.0  ;;  %2852 = vadd.xlane.f32.xlu0 %v2851_v13 }
 0x702   : > { %2855 = vadd.xlane.f32.xlu1 %v2854_v14 }
 0x703   : > { %v4970_v15 = vpop.eup %4331 }
 0x704   : > { %v2857_v16 = vsel %vm1286_vm3, %v4970_v15, 0.0 }
 0x705   : > { %2858 = vadd.xlane.f32.xlu0 %v2857_v16 }
 0x707   : > { %v4981_v23 = vpop.eup %4333 }
 0x708   : > { %v2860_v25 = vsel %vm1286_vm3, %v4981_v23, 0.0 }
 0x713   : > { %2377 = vrot.lane.b32.xlu1 %v4803_v26, %s4458_s25 }
 0x717   : > { %2379 = vrot.lane.b32.xlu1 %v4809_v33, %s4458_s25 }
 0x71b   : > { %2375 = vrot.lane.b32.xlu0 %v4689_v40, %s4458_s25 }
 0x71f   : > { %2064 = vrot.lane.b32.xlu0 %v2060_v60, %s4459_s27 }
 0x73b   : > { %2861 = vadd.xlane.f32.xlu1 %v2860_v25 }
 0x74c   : > { %2381 = vrot.lane.b32.xlu1 %v4807_v43, %s4458_s25 }
 0x750   : > { %2068 = vrot.lane.b32.xlu1 %v2061_v62, %s4460_s29 }
 0x754   : > { %2072 = vrot.lane.b32.xlu1 %v2062_v63, %s4461_s17 }
 0x78e   : > { %v2853_v26 = vpop.xlane.xlu0 %2852 }
 0x78f   : > { %v2856_v40 = vpop.xlane.xlu1 %2855  ;;  %4335 = vrcp.f32 %v2853_v26 }
 0x790   : > { %4337 = vrcp.f32 %v2856_v40 }
 0x792   : > { %v2859_v44 = vpop.xlane.xlu0 %2858 }
 0x793   : > { %v2378_v33 = vpop.permute.xlu1 %2377  ;;  %4339 = vrcp.f32 %v2859_v44 }
 0x796   : > { %v2376_v45 = vpop.permute.xlu0 %2375 }
 0x797   : > { %v2380_v20 = vpop.permute.xlu1 %2379 }
 0x798   : > { %v2387_v29 = vcombine.low %v2376_v45, %v2380_v20  ;;  %v2388_v30 = vcombine.high %v2376_v45, %v2380_v20 }
 0x799   : > { %v4336_v62 = vpop.eup %4335 }
 0x79a   : > { %v2395_v43 = vrot.slane %v2387_v29, %v4723_v56  ;;  %v2402_v34 = vrot.slane %v2388_v30, %v4723_v56  ;;  %v2065_v35 = vpop.permute.xlu0 %2064  ;;  %v4338_v4 = vpop.eup %4337  ;;  %v2864_v17 = vmul.f32 %v4336_v62, %v4962_v11 }
 0x79b   : > { %v2075_v38 = vsel %vm1286_vm3, %v2059_v61, %v2065_v35  ;;  %v2866_v16 = vmul.f32 %v4338_v4, %v4964_v12 }
 0x79d   : > { %v4340_v7 = vpop.eup %4339 }
 0x79e   : > { %v2868_v25 = vmul.f32 %v4340_v7, %v4970_v15 }
 0x7c8   : > { %v2862_v28 = vpop.xlane.xlu1 %2861 }
 0x7c9   : > { %4341 = vrcp.f32 %v2862_v28 }
 0x7cc   : > { %v2382_v31 = vpop.permute.xlu1 %2381 }
 0x7cd   : > { %v2403_v32 = vcombine.low %v2378_v33, %v2382_v31  ;;  %v2404_v42 = vcombine.high %v2378_v33, %v2382_v31 }
 0x7cf   : > { %v2411_v18 = vrot.slane %v2403_v32, %v4723_v56  ;;  %v2418_v19 = vrot.slane %v2404_v42, %v4723_v56 }
 0x7d0   : > { %v2069_v53 = vpop.permute.xlu1 %2068 }
 0x7d1   : > { %v2419_v24 = vcombine.low %v2395_v43, %v2411_v18  ;;  %v2420_v27 = vcombine.high %v2395_v43, %v2411_v18  ;;  %v2435_v36 = vcombine.low %v2402_v34, %v2418_v19  ;;  %v2436_v37 = vcombine.high %v2402_v34, %v2418_v19 }
 0x7d2   : > { %v2077_v51 = vsel %vm2076_vm4, %v2075_v38, %v2069_v53 }
 0x7d3   : > { %v2427_v39 = vrot.slane %v2419_v24, %v4733_v1  ;;  %v2434_v41 = vrot.slane %v2420_v27, %v4733_v1  ;;  %v2443_v47 = vrot.slane %v2435_v36, %v4733_v1  ;;  %v2450_v48 = vrot.slane %v2436_v37, %v4733_v1  ;;  %v4342_v14 = vpop.eup %4341 }
 0x7d4   : > { %v2073_v52 = vpop.permute.xlu1 %2072  ;;  %v2870_v40 = vmul.f32 %v4342_v14, %v4981_v23 }
 0x7d5   : > { %v2455_v54 = vcombine.low %v2427_v39, %v2434_v41  ;;  %v3980_v55 = vcombine.high %v2427_v39, %v2434_v41  ;;  %v2471_v57 = vcombine.low %v2443_v47, %v2450_v48  ;;  %v3981_v58 = vcombine.high %v2443_v47, %v2450_v48 }
 0x7d6   : > { %v2079_v49 = vsel %vm2078_vm5, %v2077_v51, %v2073_v52 }
 0x7d7   : > { %v2462_v50 = vrot.slane %v2455_v54, %v4723_v56  ;;  %v2470_v59 = vrot.slane %v3980_v55, %v4723_v56  ;;  %v2478_v60 = vrot.slane %v2471_v57, %v4723_v56  ;;  %v2486_v61 = vrot.slane %v3981_v58, %v4723_v56  ;;  %2080 = vst.msk [vmem:[#allocation3] sm:$0xff] %vm708_vm1, %v2079_v49  ;;  %v3317_v54 = vld [vmem:[%s4630_s15] sm:$0xff]  ;;  %v3318_v55 = vld [vmem:[%s4630_s15 + $0x8] sm:$0xff]  ;;  %v3319_v57 = vld [vmem:[%s4630_s15 + $0x10] sm:$0xff] }
 0x7d9   : > { %v2487_v63 = vcombine.low %v2462_v50, %v2470_v59  ;;  %v2503_v0 = vcombine.low %v2478_v60, %v2486_v61  ;;  %v2488_v2 = vcombine.high %v2462_v50, %v2470_v59  ;;  %v2504_v3 = vcombine.high %v2478_v60, %v2486_v61  ;;  %v3320_v60 = vld [vmem:[%s4630_s15 + $0x18] sm:$0xff] }
 0x7da   : > { %v4218_v61 = vpack.c.bf16 %v3318_v55, %v3317_v54  ;;  %v4222_v62 = vpack.c.bf16 %v3320_v60, %v3319_v57  ;;  %v3603_v60 = vld [vmem:[%s4657_s24 + $0x10] sm:$0xff] }
 0x7db   : > { %v2495_v5 = vrot.slane %v2487_v63, %v4733_v1  ;;  %v2511_v6 = vrot.slane %v2503_v0, %v4733_v1  ;;  %v2502_v8 = vrot.slane %v2488_v2, %v4733_v1  ;;  %v2518_v9 = vrot.slane %v2504_v3, %v4733_v1 }
 0x7dd   : > { %v2519_v10 = vcombine.low %v2495_v5, %v2511_v6  ;;  %v2520_v13 = vcombine.high %v2495_v5, %v2511_v6  ;;  %v2521_v21 = vcombine.low %v2502_v8, %v2518_v9  ;;  %v2522_v22 = vcombine.high %v2502_v8, %v2518_v9 }
 0x7de   : > { %v3315_v11 = vld [vmem:[#allocation3] sm:$0xff] }
 0x7df   : > { %4150 = vmatpush3.msra.mxu0 %v2519_v10  ;;  %4155 = vmatpush3.msra.mxu1 %v2520_v13 }
 0x7e0   : > { %4152 = vmatmul.mubr.msk.f32.vlgmr.msra.gmra.mrb[10].mxu0 %vm1286_vm3, %v2864_v17  ;;  %4157 = vmatmul.mubr.msk.f32.vlgmr.msra.gmra.mrb[16].mxu1 %vm1286_vm3, %v2866_v16  ;;  %v3996_v16 = vld [vmem:[%s5204_s0] ss:$0 sm:$0xff] }
 0x7e1   : > { %4159 = vmatprep.subr.mxu0 %v4454_v46  ;;  %4164 = vmatprep.subr.mxu1 %v4454_v46 }
 0x7e2   : > { %4160 = vmatpush3.msra.mxu0 %v2521_v21  ;;  %4165 = vmatpush3.msra.mxu1 %v2522_v22 }
 0x7e3   : > { %4161 = vmatprep.mubr.msk.f32.mxu0 %vm4455_vm2, %v4454_v46  ;;  %4166 = vmatprep.mubr.msk.f32.mxu1 %vm4455_vm2, %v4454_v46 }
 0x7e4   : > { %4162 = vmatmul.mubr.msk.f32.vlgmr.msra.gmra.mrb[12].mxu0 %vm1286_vm3, %v2868_v25  ;;  %4167 = vmatmul.mubr.msk.f32.vlgmr.msra.gmra.mrb[18].mxu1 %vm1286_vm3, %v2870_v40  ;;  %v4355_v40 = vld [vmem:[#allocation2 + $0x8] sm:$0xff] }
 0x7e5   : > { %4177 = vmatprep.mubr.msk.f32.mxu0 %vm708_vm1, %v3315_v11  ;;  %4219 = vmatprep.subr.bf16.mxu0 %v4218_v61 }
 0x7e6   : > { %4221 = vmatpush3.bf16.msra.mxu0 %v4218_v61  ;;  %v3604_v61 = vld [vmem:[%s4657_s24 + $0x18] sm:$0xff] }
 0x7e7   : > { %4223 = vmatprep.subr.bf16.mxu0 %v4222_v62 }
 0x7ea   : > { %4225 = vmatpush3.bf16.msra.mxu0 %v4222_v62  ;;  %v4238_v62 = vpack.c.bf16 %v3604_v61, %v3603_v60 }
 0x8b3   : > { %v2940_v12 = vpop.f32.mrb[10].mxu0  ;;  %v3013_v26 = vpop.f32.mrb[16].mxu1 }
 0x8b4   : > { %v4153_v15 = vpop.f32.mrb[11].mxu0  ;;  %v4158_v33 = vpop.f32.mrb[17].mxu1 }
 0x8b7   : > { %v3086_v23 = vpop.f32.mrb[12].mxu0  ;;  %v3159_v44 = vpop.f32.mrb[18].mxu1 }
 0x8b8   : > { %v3163_v20 = vcombine.low %v2940_v12, %v3086_v23  ;;  %v3164_v45 = vcombine.high %v2940_v12, %v3086_v23  ;;  %v3179_v28 = vcombine.low %v3013_v26, %v3159_v44  ;;  %v3180_v29 = vcombine.high %v3013_v26, %v3159_v44  ;;  %v4163_v30 = vpop.f32.mrb[13].mxu0  ;;  %v4168_v31 = vpop.f32.mrb[19].mxu1  ;;  %v4356_v12 = vld [vmem:[#allocation2] sm:$0xff] }
 0x8ba   : > { %v3171_v46 = vrot.slane %v3163_v20, %v4723_v56  ;;  %v3178_v32 = vrot.slane %v3164_v45, %v4723_v56  ;;  %v3187_v42 = vrot.slane %v3179_v28, %v4723_v56  ;;  %v3194_v43 = vrot.slane %v3180_v29, %v4723_v56 }
 0x8bc   : > { %v3195_v34 = vcombine.low %v3171_v46, %v3187_v42  ;;  %v3196_v35 = vcombine.high %v3171_v46, %v3187_v42  ;;  %v3211_v18 = vcombine.low %v3178_v32, %v3194_v43  ;;  %v3212_v19 = vcombine.high %v3178_v32, %v3194_v43  ;;  %v3455_v42 = vld [vmem:[%s4647_s3] sm:$0xff]  ;;  %v3456_v43 = vld [vmem:[%s4647_s3 + $0x8] sm:$0xff] }
 0x8be   : > { %v3203_v53 = vrot.slane %v3195_v34, %v4733_v1  ;;  %v3210_v24 = vrot.slane %v3196_v35, %v4733_v1  ;;  %v3219_v27 = vrot.slane %v3211_v18, %v4733_v1  ;;  %v3226_v36 = vrot.slane %v3212_v19, %v4733_v1  ;;  %v3457_v34 = vld [vmem:[%s4647_s3 + $0x10] sm:$0xff]  ;;  %v3458_v18 = vld [vmem:[%s4647_s3 + $0x18] sm:$0xff] }
 0x8bf   : > { %v4226_v35 = vpack.c.bf16 %v3456_v43, %v3455_v42  ;;  %v4230_v19 = vpack.c.bf16 %v3458_v18, %v3457_v34 }
 0x8c0   : > { %v3231_v37 = vcombine.low %v3203_v53, %v3210_v24  ;;  %v3994_v38 = vcombine.high %v3203_v53, %v3210_v24  ;;  %v3247_v39 = vcombine.low %v3219_v27, %v3226_v36  ;;  %v3995_v41 = vcombine.high %v3219_v27, %v3226_v36 }
 0x8c1   : > { %4227 = vmatprep.subr.bf16.mxu1 %v4226_v35 }
 0x8c2   : > { %v3238_v47 = vrot.slane %v3231_v37, %v4723_v56  ;;  %v3246_v48 = vrot.slane %v3994_v38, %v4723_v56  ;;  %v3254_v51 = vrot.slane %v3247_v39, %v4723_v56  ;;  %v3262_v52 = vrot.slane %v3995_v41, %v4723_v56  ;;  %4229 = vmatpush3.bf16.msra.mxu1 %v4226_v35  ;;  %v3999_v41 = vld [vmem:[%s674_s14] ss:$0 sm:$0xff] }
 0x8c3   : > { %4231 = vmatprep.subr.bf16.mxu1 %v4230_v19 }
 0x8c4   : > { %v3264_v58 = vcombine.high %v3238_v47, %v3246_v48  ;;  %v3280_v49 = vcombine.high %v3254_v51, %v3262_v52  ;;  %v3263_v50 = vcombine.low %v3238_v47, %v3246_v48  ;;  %v3279_v59 = vcombine.low %v3254_v51, %v3262_v52  ;;  %v4000_v48 = vld [vmem:[%s677_s16] ss:$0 sm:$0xff] }
 0x8c6   : > { %v3278_v63 = vrot.slane %v3264_v58, %v4733_v1  ;;  %v3294_v0 = vrot.slane %v3280_v49, %v4733_v1  ;;  %v3271_v2 = vrot.slane %v3263_v50, %v4733_v1  ;;  %v3287_v3 = vrot.slane %v3279_v59, %v4733_v1  ;;  %4233 = vmatpush3.bf16.msra.mxu1 %v4230_v19  ;;  %v3601_v49 = vld [vmem:[%s4657_s24] sm:$0xff]  ;;  %v3602_v50 = vld [vmem:[%s4657_s24 + $0x8] sm:$0xff] }
 0x8c7   : > { %v4234_v59 = vpack.c.bf16 %v3602_v50, %v3601_v49 }
 0x8c8   : > { %v3298_v56 = vcombine.high %v3278_v63, %v3294_v0  ;;  %v3296_v4 = vcombine.high %v3271_v2, %v3287_v3  ;;  %v3297_v5 = vcombine.low %v3278_v63, %v3294_v0  ;;  %v3295_v6 = vcombine.low %v3271_v2, %v3287_v3  ;;  %v3605_v63 = vld [vmem:[%s4657_s24 + $0x20] sm:$0xff]  ;;  %v3606_v0 = vld [vmem:[%s4657_s24 + $0x28] sm:$0xff]  ;;  %v3607_v3 = vld [vmem:[%s4657_s24 + $0x30] sm:$0xff] }
 0x8c9   : > { %4235 = vmatprep.subr.bf16.mxu0 %v4234_v59  ;;  %v4242_v2 = vpack.c.bf16 %v3606_v0, %v3605_v63 }
 0x8ca   : > { %3308 = vrot.lane.b32.xlu1 %v3298_v56, %s4461_s17  ;;  %3300 = vrot.lane.b32.xlu0 %v3296_v4, %s4459_s27  ;;  %v3608_v56 = vld [vmem:[%s4657_s24 + $0x38] sm:$0xff] }
 0x8cb   : > { %v4246_v4 = vpack.c.bf16 %v3608_v56, %v3607_v3 }
 0x8ce   : > { %3304 = vrot.lane.b32.xlu0 %v3297_v5, %s4460_s29  ;;  %v4001_v5 = vld [vmem:[%s685_s5] ss:$0 sm:$0xff] }
 0x93c   : > { %v3301_v7 = vpop.permute.xlu0 %3300  ;;  %v3309_v1 = vpop.permute.xlu1 %3308 }
 0x93d   : > { %v3311_v8 = vsel %vm1286_vm3, %v3295_v6, %v3301_v7 }
 0x940   : > { %v3305_v9 = vpop.permute.xlu0 %3304 }
 0x941   : > { %v3312_v10 = vsel %vm2076_vm4, %v3311_v8, %v3305_v9 }
 0x942   : > { %v3313_v13 = vsel %vm2078_vm5, %v3312_v10, %v3309_v1 }
 0x943   : > { %3314 = vst.msk [vmem:[#allocation3 + $0x8] sm:$0xff] %vm708_vm1, %v3313_v13 }
 0x94a   : > { %v3316_v14 = vld [vmem:[#allocation3 + $0x8] sm:$0xff] }
 0x94b   : > { %4178 = vmatmul.mubr.msk.f32.vlgmr.msra.gmra.mrb[14].mxu0 %vm708_vm1, %v3316_v14 }
 0x94c   : > { %4237 = vmatpush3.bf16.msra.mxu0 %v4234_v59 }
 0x94d   : > { %4239 = vmatprep.subr.bf16.mxu0 %v4238_v62 }
 0x950   : > { %4241 = vmatpush3.bf16.msra.mxu0 %v4238_v62  ;;  %v4004_v62 = vld [vmem:[%s693_s28] ss:$0 sm:$0xff]  ;;  %s5205_s28 = sld [smem:[#allocation16_spill]] (!%p4007_p6) }
 0x951   : > { %4243 = vmatprep.subr.bf16.mxu0 %v4242_v2 }
 0x954   : > { %4245 = vmatpush3.bf16.msra.mxu0 %v4242_v2 }
 0x955   : > { %4247 = vmatprep.subr.bf16.mxu0 %v4246_v4 }
 0x958   : > { %4249 = vmatpush3.bf16.msra.mxu0 %v4246_v4 }
 0xa1e   : > { %v4179_v17 = vpop.f32.mrb[14].mxu0 }
 0xa1f   : > { %v3406_v21 = vadd.f32 %v4179_v17, %v3996_v16  ;;  %v3400_v22 = vpop.f32.mrb[15].mxu0 }
 0xa20   : > { %v3401_v25 = vadd.f32 %v3996_v16, %v3400_v22 }
 0xa21   : > { %v5060_v11 = vadd.f32 %v4355_v40, %v3406_v21 }
 0xa22   : > { %v5062_v26 = vadd.f32 %v4356_v12, %v3401_v25 }
 0xa23   : > { %v3416_v15 = vsel %vm708_vm1, %v5060_v11, 0.0 }
 0xa24   : > { %3417 = vadd.xlane.f32.xlu1 %v3416_v15  ;;  %v3413_v33 = vsel %vm708_vm1, %v5062_v26, 0.0 }
 0xa25   : > { %3414 = vadd.xlane.f32.xlu0 %v3413_v33 }
 0xab1   : > { %v3418_v23 = vpop.xlane.xlu1 %3417 }
 0xab2   : > { %v3420_v44 = vmul.f32 0.03125, %v3418_v23  ;;  %v3415_v20 = vpop.xlane.xlu0 %3414 }
 0xab3   : > { %v3419_v45 = vmul.f32 0.03125, %v3415_v20 }
 0xab4   : > { %v3422_v28 = vsub.f32 %v5060_v11, %v3420_v44 }
 0xab5   : > { %v3421_v29 = vsub.f32 %v5062_v26, %v3419_v45 }
 0xab6   : > { %v3424_v46 = vmul.f32 %v3422_v28, %v3422_v28 }
 0xab7   : > { %v3423_v30 = vmul.f32 %v3421_v29, %v3421_v29 }
 0xab8   : > { %v3428_v32 = vsel %vm708_vm1, %v3424_v46, 0.0 }
 0xab9   : > { %v3425_v31 = vsel %vm708_vm1, %v3423_v30, 0.0 }
 0xaba   : > { %3426 = vadd.xlane.f32.xlu0 %v3425_v31 }
 0xabe   : > { %3429 = vadd.xlane.f32.xlu0 %v3428_v32 }
 0xb47   : > { %v3427_v53 = vpop.xlane.xlu0 %3426 }
 0xb48   : > { %v3431_v24 = vmul.f32 0.03125, %v3427_v53 }
 0xb4a   : > { %v3433_v27 = vadd.f32 1e-06, %v3431_v24 }
 0xb4b   : > { %v3430_v36 = vpop.xlane.xlu0 %3429 }
 0xb4c   : > { %4343 = vrsqrt.f32 %v3433_v27  ;;  %v3432_v37 = vmul.f32 0.03125, %v3430_v36 }
 0xb4e   : > { %v3434_v38 = vadd.f32 1e-06, %v3432_v37 }
 0xb50   : > { %4345 = vrsqrt.f32 %v3434_v38 }
 0xb56   : > { %v4344_v39 = vpop.eup %4343 }
 0xb57   : > { %v3437_v47 = vmul.f32 %v4344_v39, %v3421_v29 }
 0xb59   : > { %v3445_v51 = vmul.f32 %v3999_v41, %v3437_v47 }
 0xb5a   : > { %v4346_v52 = vpop.eup %4345 }
 0xb5b   : > { %v3438_v54 = vmul.f32 %v4346_v52, %v3422_v28  ;;  %v3453_v55 = vadd.f32 %v4000_v48, %v3445_v51 }
 0xb5d   : > { %v3446_v57 = vmul.f32 %v3999_v41, %v3438_v54  ;;  %4188 = vmatprep.mubr.msk.f32.mxu1 %vm708_vm1, %v3453_v55 }
 0xb5f   : > { %v3454_v58 = vadd.f32 %v4000_v48, %v3446_v57 }
 0xb61   : > { %4189 = vmatmul.mubr.msk.f32.vlgmr.msra.gmra.mrb[20].mxu1 %vm708_vm1, %v3454_v58 }
 0xc34   : > { %v4190_v6 = vpop.f32.mrb[20].mxu1 }
 0xc35   : > { %v3544_v7 = vadd.f32 %v4190_v6, %v4001_v5  ;;  %v3538_v8 = vpop.f32.mrb[21].mxu1 }
 0xc36   : > { %v3539_v9 = vadd.f32 %v4001_v5, %v3538_v8 }
 0xc37   : > { %v3550_v1 = vmul.f32 0.70710677, %v3544_v7  ;;  %v3548_v59 = vmul.f32 0.5, %v3544_v7 }
 0xc38   : > { %v3549_v10 = vmul.f32 0.70710677, %v3539_v9  ;;  %v3547_v49 = vmul.f32 0.5, %v3539_v9 }
 0xc39   : > { %v3552_v13 = vand.u32 2147483647, %v3550_v1  ;;  %vm3592_vm6 = vcmp.ge.f32.partialorder %v3550_v1, 0.0 }
 0xc3a   : > { %v3551_v14 = vand.u32 2147483647, %v3549_v10  ;;  %vm3591_vm7 = vcmp.ge.f32.partialorder %v3549_v10, 0.0 }
 0xc3b   : > { %v3554_v16 = vmul.f32 0.3275911, %v3552_v13  ;;  %v3580_v25 = vsub.f32 0.0, %v3552_v13 }
 0xc3c   : > { %v3553_v17 = vmul.f32 0.3275911, %v3551_v14  ;;  %v3579_v40 = vsub.f32 0.0, %v3551_v14 }
 0xc3d   : > { %v3556_v21 = vadd.f32 1.0, %v3554_v16  ;;  %v3582_v15 = vmul.f32 %v3580_v25, %v3552_v13 }
 0xc3e   : > { %v3555_v22 = vadd.f32 1.0, %v3553_v17  ;;  %v3581_v44 = vmul.f32 %v3579_v40, %v3551_v14 }
 0xc3f   : > { %4347 = vrcp.f32 %v3556_v21  ;;  %v3585_v28 = vmul.f32 1.442695, %v3582_v15 }
 0xc40   : > { %4349 = vrcp.f32 %v3555_v22  ;;  %v3583_v31 = vmul.f32 1.442695, %v3581_v44  ;;  %v4009_v44 = vld [vmem:[%s5206_s13] ss:$0 sm:$0xff] (!%p4007_p6) }
 0xc41   : > { %4351 = vpow2.f32 %v3585_v28 }
 0xc42   : > { %4353 = vpow2.f32 %v3583_v31 }
 0xc49   : > { %v4348_v12 = vpop.eup %4347 }
 0xc4a   : > { %v4350_v33 = vpop.eup %4349  ;;  %v3562_v23 = vmul.f32 1.0614054, %v4348_v12 }
 0xc4b   : > { %v3561_v20 = vmul.f32 1.0614054, %v4350_v33  ;;  %v4352_v37 = vpop.eup %4351 }
 0xc4c   : > { %v3564_v45 = vadd.f32 -1.4531521, %v3562_v23  ;;  %v4354_v39 = vpop.eup %4353 }
 0xc4d   : > { %v3563_v29 = vadd.f32 -1.4531521, %v3561_v20 }
 0xc4e   : > { %v3566_v30 = vmul.f32 %v4348_v12, %v3564_v45 }
 0xc4f   : > { %v3565_v46 = vmul.f32 %v4350_v33, %v3563_v29 }
 0xc50   : > { %v3568_v32 = vadd.f32 1.4214138, %v3566_v30 }
 0xc51   : > { %v3567_v42 = vadd.f32 1.4214138, %v3565_v46 }
 0xc52   : > { %v3570_v43 = vmul.f32 %v4348_v12, %v3568_v32 }
 0xc53   : > { %v3569_v34 = vmul.f32 %v4350_v33, %v3567_v42 }
 0xc54   : > { %v3572_v35 = vadd.f32 -0.28449672, %v3570_v43 }
 0xc55   : > { %v3571_v18 = vadd.f32 -0.28449672, %v3569_v34 }
 0xc56   : > { %v3574_v19 = vmul.f32 %v4348_v12, %v3572_v35 }
 0xc57   : > { %v3573_v53 = vmul.f32 %v4350_v33, %v3571_v18 }
 0xc58   : > { %v3576_v24 = vadd.f32 0.2548296, %v3574_v19 }
 0xc59   : > { %v3575_v27 = vadd.f32 0.2548296, %v3573_v53 }
 0xc5a   : > { %v3578_v36 = vmul.f32 %v4348_v12, %v3576_v24 }
 0xc5b   : > { %v3577_v38 = vmul.f32 %v4350_v33, %v3575_v27  ;;  %v4008_v33 = vld [vmem:[%s5205_s28] ss:$0 sm:$0xff] (!%p4007_p6) }
 0xc5c   : > { %v3588_v41 = vmul.f32 %v4352_v37, %v3578_v36 }
 0xc5d   : > { %v3587_v47 = vmul.f32 %v4354_v39, %v3577_v38 }
 0xc5e   : > { %v3590_v48 = vsub.f32 1.0, %v3588_v41 }
 0xc5f   : > { %v3589_v51 = vsub.f32 1.0, %v3587_v47 }
 0xc60   : > { %v3594_v52 = vsub.f32 0.0, %v3590_v48 }
 0xc61   : > { %v3593_v54 = vsub.f32 0.0, %v3589_v51 }
 0xc62   : > { %v3596_v55 = vsel %vm3592_vm6, %v3590_v48, %v3594_v52 }
 0xc63   : > { %v3598_v57 = vadd.f32 1.0, %v3596_v55  ;;  %v3595_v58 = vsel %vm3591_vm7, %v3589_v51, %v3593_v54 }
 0xc64   : > { %v3597_v50 = vadd.f32 1.0, %v3595_v58 }
 0xc65   : > { %v3600_v61 = vmul.f32 %v3598_v57, %v3548_v59 }
 0xc66   : > { %v3599_v60 = vmul.f32 %v3597_v50, %v3547_v49 }
 0xc68   : > { %4207 = vmatprep.mubr.msk.f32.mxu0 %vm3616_vm8, %v3599_v60 }
 0xc69   : > { %4208 = vmatmul.mubr.msk.f32.vlgmr.msra.gmra.mrb[16].mxu0 %vm3616_vm8, %v3600_v61 }
 0xd3c   : > { %v4209_v63 = vpop.f32.mrb[16].mxu0  ;;  %3705 = sbr.rel (%p4007_p6) target bundleno = 3712 (0xe80), region = 92 }
 0xd3d   : > { %v3695_v0 = vadd.f32 %v4209_v63, %v4004_v62  ;;  %v3689_v2 = vpop.f32.mrb[17].mxu0 }
 0xd3e   : > { %v3690_v3 = vadd.f32 %v4004_v62, %v3689_v2 }
 0xd3f   : > { %v3699_v56 = vadd.f32 %v3695_v0, %v5060_v11 }
 0xd40   : > { %v3698_v4 = vadd.f32 %v3690_v3, %v5062_v26 }
 0xd41   : > { %3701 = vst.msk [vmem:[#allocation2 + $0x8] sm:$0xff] %vm708_vm1, %v3699_v56  ;;  %v3711_v6 = vsel (!%p4007_p6), %vm708_vm1, %v3699_v56, 0.0 }
 0xd42   : > { %3700 = vst.msk [vmem:[#allocation2] sm:$0xff] %vm708_vm1, %v3698_v4  ;;  %v3708_v5 = vsel (!%p4007_p6), %vm708_vm1, %v3698_v4, 0.0 }
 0xd43   : > { %3709 = vadd.xlane.f32.xlu0 %v3708_v5 }
 0xd47   : > { %3712 = vadd.xlane.f32.xlu0 %v3711_v6 }
 0xdd0   : > { %v3710_v7 = vpop.xlane.xlu0 %3709 }
 0xdd1   : > { %v3714_v8 = vmul.f32 0.03125, %v3710_v7 }
 0xdd3   : > { %v3716_v9 = vsub.f32 %v3698_v4, %v3714_v8 }
 0xdd4   : > { %v3713_v1 = vpop.xlane.xlu0 %3712 }
 0xdd5   : > { %v3715_v11 = vmul.f32 0.03125, %v3713_v1  ;;  %v3718_v10 = vmul.f32 %v3716_v9, %v3716_v9 }
 0xdd7   : > { %v3717_v26 = vsub.f32 %v3699_v56, %v3715_v11  ;;  %v3720_v13 = vsel %vm708_vm1, %v3718_v10, 0.0 }
 0xdd8   : > { %3721 = vadd.xlane.f32.xlu1 %v3720_v13 }
 0xdd9   : > { %v3719_v14 = vmul.f32 %v3717_v26, %v3717_v26 }
 0xddb   : > { %v3723_v16 = vsel %vm708_vm1, %v3719_v14, 0.0 }
 0xddc   : > { %3724 = vadd.xlane.f32.xlu1 %v3723_v16 }
 0xe65   : > { %v3722_v17 = vpop.xlane.xlu1 %3721 }
 0xe66   : > { %v3726_v21 = vmul.f32 0.03125, %v3722_v17 }
 0xe68   : > { %v3728_v22 = vadd.f32 1e-05, %v3726_v21 }
 0xe69   : > { %v3725_v25 = vpop.xlane.xlu1 %3724 }
 0xe6a   : > { %4357 = vrsqrt.f32 %v3728_v22  ;;  %v3727_v40 = vmul.f32 0.03125, %v3725_v25 }
 0xe6c   : > { %v3729_v12 = vadd.f32 1e-05, %v3727_v40 }
 0xe6e   : > { %4359 = vrsqrt.f32 %v3729_v12 }
 0xe74   : > { %v4358_v15 = vpop.eup %4357 }
 0xe75   : > { %v3732_v23 = vmul.f32 %v4358_v15, %v3716_v9 }
 0xe77   : > { %v3740_v20 = vmul.f32 %v4008_v33, %v3732_v23 }
 0xe78   : > { %v4360_v45 = vpop.eup %4359 }
 0xe79   : > { %v3748_v28 = vadd.f32 %v4009_v44, %v3740_v20  ;;  %v3733_v29 = vmul.f32 %v4360_v45, %v3717_v26 }
 0xe7b   : > { %3750 = vst.msk [vmem:[#allocation7] sm:$0xff] %vm708_vm1, %v3748_v28  ;;  %v3741_v30 = vmul.f32 %v4008_v33, %v3733_v29 }
 0xe7d   : > { %v3749_v31 = vadd.f32 %v4009_v44, %v3741_v30 }
 0xe7f   : > { %3751 = vst.msk [vmem:[#allocation7 + $0x8] sm:$0xff] %vm708_vm1, %v3749_v31 }
 0xe80 PF: > { %s5207_s25 = sld [smem:[#allocation11_spill]]  ;;  %s4462_s15 = smov [#allocation7]  }
 0xe81   : > { %s3761_s22 = sshll.u32 %s4462_s15, 4  ;;  %s3762_s22 = int_to_ptr.vmem [resolvable:$true] %s3761_s22 }
 0xe82   : > { %s4389_s0 = scalar_lea.vmem %s3762_s22, 256  ;;  %p4396_p13 = scmp.lt.s32.totalorder %s3762_s22, %s3762_s22 }
 0xe83   : > { %p4390_p10 = scmp.ne.s32.totalorder %s3762_s22, %s4389_s0  ;;  %p4397_p0 = scmp.lt.s32.totalorder %s4389_s0, %s4389_s0 }
 0xe85   : > { %p4398_p1 = por %p4397_p0, %p4396_p13 }
 0xe86   : > { %s5208_s29 = sadd.s32 4294967295, %s5207_s25  }
 0xe87   : > { %p5125_p8 = scmp.eq.s32.totalorder %s5208_s29, 1 }
 0xe89   : > { %p4391_p11 = pnand %p4390_p10, %p5125_p8 }
 0xe8b   : > { %p4392_p12 = pneg %p4391_p11 }
 0xe8d   : > { %p4399_p2 = pnand %p4398_p1, %p4392_p12 }
 0xe8f   : > { %4402 = shalt.err (!%p4399_p2)
}
 0xe90   : > { %s5210_s3 = sld [smem:[#allocation18_spill]] }
 0xe96   : > { %s4403_s23 = scalar_lea.hbm %s5210_s3, 256 }
 0xe97   : > { %p4404_p5 = scmp.ne.s32.totalorder %s5210_s3, %s4403_s23  ;;  %p4409_p3 = scmp.lt.u32.totalorder %s4403_s23, %s5210_s3 }
 0xe99   : > { %p4405_p7 = pnand %p4404_p5, %p5125_p8 }
 0xe9b   : > { %p4406_p9 = pneg %p4405_p7 }
 0xe9d   : > { %p4411_p4 = pnand %p4409_p3, %p4406_p9 }
 0xe9f   : > { %4414 = shalt.err (!%p4411_p4)
}
 0xea0   : > { %s4463_s18 = smov 128  }
 0xea1   : > { %4255 = dma.vmem_to_hbm [thread:$0]  (%p5125_p8), %s3762_s22, 256, %s5210_s3, [#allocation6], %s4463_s18, %s4463_s18, %s4459_s27  }
 0xea2   : > { %4432 = dma.done.wait (%p5125_p8), [#allocation6], 256  }
 0xea3   : > { %4434 = vsyncadd (%p5125_p8), [#allocation6], 4294967040 }
 0xea4 PF: > { %s5211_s30 = sld [smem:[#allocation11_spill]]  ;;  %s5212_s18 = sld [smem:[#allocation10_spill]] }
 0xea5   : > { %s5213_s19 = sld [smem:[#allocation12_spill]] }
 0xeaa   : > { %s27_s20 = sadd.s32 1, %s5211_s30  }
 0xeab   : > { %p24_p6 = scmp.ge.s32.totalorder %s27_s20, 4  }
 0xead   :  { %26 = sbr.rel (!%p24_p6) target bundleno = 10 (0xa), region = 155 }
 0xeb4   :  { %3777 = vsyncpa [#allocation5], 1 }
 0xeb5   :  { %3779 = vsyncpa [#allocation5 + $0x1], 1 }
 0xeb6   :  { %3780 = vsyncpa [#allocation6], 1 }
 0xeb7   :  { %3782 = vsyncpa [#allocation6 + $0x1], 1 }

</bundles_post_ra>
